<compile_context>
chip_gen: v6e
topology: v6e:2x2x1
jax: 0.10.0
libtpu: 0.0.40
codegen_flags: <defaults>
</compile_context>

<pallas_src>
import numpy as np

import jax
import jax.numpy as jnp
from jax.experimental import pallas as pl
from jax.experimental.pallas import tpu as pltpu


KSIZE, STRIDE = 3, 2      # both convs: kernel 3, stride 2, VALID padding
C_IN, C1, C2, HIDDEN = 3, 16, 32, 128


def _conv_out(s):
    return (s - KSIZE) // STRIDE + 1


# ---------------------------------------------------------------------------
# Fused Pallas kernel: conv1 + conv2 + flatten/concat + fc1 + fc2
# ---------------------------------------------------------------------------
def _dqn_fused_kernel(p1_ref, qpos_ref,
                      w1_ref, b1_ref,
                      sel_ref, w2s_ref, b2_ref,
                      w1s_ref, w1q_ref, fc1b_ref,
                      fc2w_ref, fc2b_ref,
                      o_ref, y2_ref):
    f32 = jnp.float32
    B = qpos_ref.shape[0]
    taps = sel_ref.shape[0]          # KH*KW = 9 conv2 kernel taps
    rows2 = sel_ref.shape[1]         # H2*W2*B conv2 output rows, (spatial, batch) order
    n_sp2 = rows2 // B               # H2*W2
    c2 = w2s_ref.shape[2]

    # ---- conv1: im2col-matmul + bias + ReLU (patches prepared by wrapper) ----
    y1 = jnp.dot(p1_ref[...], w1_ref[...], preferred_element_type=f32)
    y1 = jnp.maximum(y1 + b1_ref[...], 0.0)                 # (B*H1*W1, 16)

    # ---- conv2: per-tap row gather (0/1 matmul) + matmul, accumulated ------
    acc2 = jnp.zeros((rows2, c2), f32)
    for t in range(taps):                                    # unrolled, 9 taps
        g = jnp.dot(sel_ref[t], y1, preferred_element_type=f32)          # (rows2, 16)
        acc2 = acc2 + jnp.dot(g, w2s_ref[t], preferred_element_type=f32)  # (rows2, 32)
    y2_ref[...] = jnp.maximum(acc2 + b2_ref[...], 0.0)       # VMEM scratch

    # ---- fc1: qpos part + per-spatial-position flat part (PyTorch NCHW
    #      flatten is pre-folded into w1s at prepare_params time) + ReLU -----
    h = jnp.dot(qpos_ref[...], w1q_ref[...], preferred_element_type=f32)  # (B, 128)
    for s in range(n_sp2):                                   # unrolled, 9 positions
        h = h + jnp.dot(y2_ref[s * B:(s + 1) * B, :], w1s_ref[s],
                        preferred_element_type=f32)
    h = jnp.maximum(h + fc1b_ref[...], 0.0)                  # f32 epilogue (v5e-safe)

    # ---- fc2 ----------------------------------------------------------------
    q = jnp.dot(h, fc2w_ref[...], preferred_element_type=f32) + fc2b_ref[...]
    o_ref[...] = q.astype(o_ref.dtype)


# ---------------------------------------------------------------------------
# Plain-JAX input prep (single tiny XLA copy on the raw image)
# ---------------------------------------------------------------------------
def _im2col(x_nhwc):
    B, H, W, C = x_nhwc.shape
    Ho, Wo = _conv_out(H), _conv_out(W)
    cols = []
    for kh in range(KSIZE):
        for kw in range(KSIZE):
            cols.append(x_nhwc[:, kh:kh + STRIDE * (Ho - 1) + 1:STRIDE,
                               kw:kw + STRIDE * (Wo - 1) + 1:STRIDE, :])
    p = jnp.stack(cols, axis=3)                  # (B, Ho, Wo, KH*KW, C)
    return p.reshape(B * Ho * Wo, KSIZE * KSIZE * C), Ho, Wo


def _conv2_gather_const(B, H1, W1, H2, W2):
    """0/1 matrices gathering conv2's input rows out of the conv1 output.

    sel[t, s*B + b, b*H1*W1 + (2*h2+kh)*W1 + (2*w2+kw)] = 1
    with t = kh*KSIZE + kw and s = h2*W2 + w2.  Built once at trace time
    (shape-only) and kept as a ~64 KB VMEM-resident constant, so conv2's
    "im2col" never materializes in HBM.
    """
    sel = np.zeros((KSIZE * KSIZE, H2 * W2 * B, B * H1 * W1), np.float32)
    for kh in range(KSIZE):
        for kw in range(KSIZE):
            t = kh * KSIZE + kw
            for h2 in range(H2):
                for w2 in range(W2):
                    s = h2 * W2 + w2
                    for b in range(B):
                        src = (b * H1 * W1
                               + (STRIDE * h2 + kh) * W1
                               + (STRIDE * w2 + kw))
                        sel[t, s * B + b, src] = 1.0
    return jnp.asarray(sel)


# ---------------------------------------------------------------------------
# One-time parameter layout folding (hoisted out of the hot path)
# ---------------------------------------------------------------------------
def prepare_params(p, qpos_dim):
    cout1 = p["conv1_w"].shape[0]
    cin1 = p["conv1_w"].shape[1]
    cout2 = p["conv2_w"].shape[0]
    cin2 = p["conv2_w"].shape[1]
    hidden = p["fc1_w"].shape[0]
    n_act = p["fc2_w"].shape[0]
    flat = p["fc1_w"].shape[1] - qpos_dim
    n_sp2 = flat // cout2                                    # H2*W2

    # conv weights: OIHW -> (KH,KW,Cin,Cout) matmul layouts
    w1 = jnp.transpose(p["conv1_w"], (2, 3, 1, 0)).reshape(KSIZE * KSIZE * cin1, cout1)
    w2s = jnp.transpose(p["conv2_w"], (2, 3, 1, 0)).reshape(KSIZE * KSIZE, cin2, cout2)
    # fc1: fold PyTorch's NCHW flatten (column j = c*H2*W2 + s) into a
    # per-spatial-position weight stack: w1s[s, c, :] = fc1_w[:, c*H2*W2 + s]
    w1s = jnp.transpose(p["fc1_w"][:, :flat].reshape(hidden, cout2, n_sp2), (2, 1, 0))
    return dict(
        w1=w1,
        b1=p["conv1_b"].reshape(1, cout1),
        w2s=w2s,
        b2=p["conv2_b"].reshape(1, cout2),
        w1s=w1s,                                    # (H2*W2, Cout2, hidden)
        w1q=p["fc1_w"][:, flat:].T,                 # (qpos_dim, hidden)
        fc1b=p["fc1_b"].reshape(1, hidden),
        fc2w=p["fc2_w"].T,                          # (hidden, num_actions)
        fc2b=p["fc2_b"].reshape(1, n_act),
    )


# ---------------------------------------------------------------------------
# DQN forward: one fused pallas_call (matches the PyTorch module semantics)
# ---------------------------------------------------------------------------
@jax.jit
def dqn_forward(prep, image_nchw, qpos):
    B = image_nchw.shape[0]
    x = jnp.transpose(image_nchw, (0, 2, 3, 1))              # NCHW -> NHWC
    p1, H1, W1 = _im2col(x)                                  # (B*H1*W1, 27)
    H2, W2 = _conv_out(H1), _conv_out(W1)
    sel = _conv2_gather_const(B, H1, W1, H2, W2)             # compile-time const

    n_act = prep["fc2w"].shape[1]
    c2 = prep["b2"].shape[1]
    vmem_specs = [pl.BlockSpec(memory_space=pltpu.MemorySpace.VMEM)
                  for _ in range(12)]

    return pl.pallas_call(
        _dqn_fused_kernel,
        out_shape=jax.ShapeDtypeStruct((B, n_act), jnp.float32),
        in_specs=vmem_specs,
        out_specs=pl.BlockSpec(memory_space=pltpu.MemorySpace.VMEM),
        scratch_shapes=[pltpu.VMEM((H2 * W2 * B, c2), jnp.float32)],
    )(p1, qpos.astype(jnp.float32),
      prep["w1"], prep["b1"],
      sel, prep["w2s"], prep["b2"],
      prep["w1s"], prep["w1q"], prep["fc1b"],
      prep["fc2w"], prep["fc2b"])


# ---------------------------------------------------------------------------
# Deterministic parameter init (PyTorch layouts: OIHW convs, (out,in) linears)
# ---------------------------------------------------------------------------
def init_params(key, image_size, qpos_dim, num_actions):
    size2 = _conv_out(_conv_out(image_size))
    flat = C2 * size2 * size2
    ks = jax.random.split(key, 8)
    s = 0.05
    return {
        "conv1_w": jax.random.normal(ks[0], (C1, C_IN, KSIZE, KSIZE), jnp.float32) * s,
        "conv1_b": jax.random.normal(ks[1], (C1,), jnp.float32) * s,
        "conv2_w": jax.random.normal(ks[2], (C2, C1, KSIZE, KSIZE), jnp.float32) * s,
        "conv2_b": jax.random.normal(ks[3], (C2,), jnp.float32) * s,
        "fc1_w":   jax.random.normal(ks[4], (HIDDEN, flat + qpos_dim), jnp.float32) * s,
        "fc1_b":   jax.random.normal(ks[5], (HIDDEN,), jnp.float32) * s,
        "fc2_w":   jax.random.normal(ks[6], (num_actions, HIDDEN), jnp.float32) * s,
        "fc2_b":   jax.random.normal(ks[7], (num_actions,), jnp.float32) * s,
    }


# Pure-JAX/XLA reference (high precision) for the correctness check
def dqn_reference(params, image, qpos):
    hp = jax.lax.Precision.HIGHEST
    y = jax.lax.conv_general_dilated(image, params["conv1_w"], (2, 2), "VALID",
                                     dimension_numbers=("NCHW", "OIHW", "NCHW"),
                                     precision=hp)
    y = jax.nn.relu(y + params["conv1_b"][None, :, None, None])
    y = jax.lax.conv_general_dilated(y, params["conv2_w"], (2, 2), "VALID",
                                     dimension_numbers=("NCHW", "OIHW", "NCHW"),
                                     precision=hp)
    y = jax.nn.relu(y + params["conv2_b"][None, :, None, None])
    z = jnp.concatenate([y.reshape(y.shape[0], -1), qpos], axis=1)
    h = jax.nn.relu(jnp.dot(z, params["fc1_w"].T, precision=hp) + params["fc1_b"])
    return jnp.dot(h, params["fc2_w"].T, precision=hp) + params["fc2_b"]


if __name__ == "__main__":
    # Small shapes consistent with the module's forward:
    # image_size=16 -> conv sizes 7 -> 3, flat = 32*3*3 = 288
    B, IMG, QPOS_DIM, NUM_ACTIONS = 2, 16, 2, 16

    key = jax.random.PRNGKey(0)
    k_img, k_q, k_p = jax.random.split(key, 3)
    image = jax.random.normal(k_img, (B, 3, IMG, IMG), jnp.float32)   # NCHW input
    qpos = jax.random.normal(k_q, (B, QPOS_DIM), jnp.float32)
    params = init_params(k_p, IMG, QPOS_DIM, NUM_ACTIONS)

    prep = prepare_params(params, QPOS_DIM)          # one-time layout folding

    q_values = jax.block_until_ready(dqn_forward(prep, image, qpos))
    assert q_values.shape == (B, NUM_ACTIONS), q_values.shape

    q_ref = jax.block_until_ready(dqn_reference(params, image, qpos))
    max_err = float(jnp.max(jnp.abs(q_values - q_ref)))
    assert jnp.allclose(q_values, q_ref, atol=1e-3, rtol=1e-3), (
        f"mismatch vs XLA reference, max abs err = {max_err}")

    print("KERNEL_OK")
</pallas_src>

<mosaic_0001>
module attributes {stable_mosaic.version = 11 : i64} {
  func.func @_dqn_fused_kernel(%arg0: memref<98x27xf32, #tpu.memory_space<vmem>>, %arg1: memref<2x2xf32, #tpu.memory_space<vmem>>, %arg2: memref<27x16xf32, #tpu.memory_space<vmem>>, %arg3: memref<1x16xf32, #tpu.memory_space<vmem>>, %arg4: memref<9x18x98xf32, #tpu.memory_space<vmem>>, %arg5: memref<9x16x32xf32, #tpu.memory_space<vmem>>, %arg6: memref<1x32xf32, #tpu.memory_space<vmem>>, %arg7: memref<9x32x128xf32, #tpu.memory_space<vmem>>, %arg8: memref<2x128xf32, #tpu.memory_space<vmem>>, %arg9: memref<1x128xf32, #tpu.memory_space<vmem>>, %arg10: memref<128x16xf32, #tpu.memory_space<vmem>>, %arg11: memref<1x16xf32, #tpu.memory_space<vmem>>, %arg12: memref<2x16xf32, #tpu.memory_space<vmem>>, %arg13: memref<18x32xf32, #tpu.memory_space<vmem>>) attributes {dimension_semantics = [], scalar_prefetch = 0 : i64, scratch_operands = 1 : i64, tpu.core_type = #tpu.core_type<tc>} {
    %c0 = arith.constant 0 : index
    %c0_0 = arith.constant 0 : index
    %0 = vector.load %arg0[%c0, %c0_0] : memref<98x27xf32, #tpu.memory_space<vmem>>, vector<98x27xf32>
    %c0_1 = arith.constant 0 : index
    %c0_2 = arith.constant 0 : index
    %1 = vector.load %arg2[%c0_1, %c0_2] : memref<27x16xf32, #tpu.memory_space<vmem>>, vector<27x16xf32>
    %cst = arith.constant dense<0.000000e+00> : vector<98x16xf32>
    %2 = tpu.matmul %0, %1, %cst {dimension_numbers = #tpu.dot_dimension_numbers<[1], [0], [0], [1], [0, 0, 1, 1], [], []>} : vector<98x27xf32>, vector<27x16xf32>, vector<98x16xf32> -> vector<98x16xf32>
    %c0_3 = arith.constant 0 : index
    %c0_4 = arith.constant 0 : index
    %3 = vector.load %arg3[%c0_3, %c0_4] : memref<1x16xf32, #tpu.memory_space<vmem>>, vector<1x16xf32>
    %4 = vector.broadcast %3 : vector<1x16xf32> to vector<98x16xf32>
    %5 = arith.addf %2, %4 : vector<98x16xf32>
    %cst_5 = arith.constant 0.000000e+00 : f32
    %6 = vector.broadcast %cst_5 : f32 to vector<98x16xf32>
    %7 = arith.maximumf %5, %6 : vector<98x16xf32>
    %cst_6 = arith.constant 0.000000e+00 : f32
    %8 = vector.broadcast %cst_6 : f32 to vector<18x32xf32>
    %c0_7 = arith.constant 0 : index
    %c0_8 = arith.constant 0 : index
    %c0_9 = arith.constant 0 : index
    %9 = vector.load %arg4[%c0_7, %c0_8, %c0_9] : memref<9x18x98xf32, #tpu.memory_space<vmem>>, vector<1x18x98xf32>
    %10 = vector.shape_cast %9 : vector<1x18x98xf32> to vector<18x98xf32>
    %cst_10 = arith.constant dense<0.000000e+00> : vector<18x16xf32>
    %11 = tpu.matmul %10, %7, %cst_10 {dimension_numbers = #tpu.dot_dimension_numbers<[1], [0], [0], [1], [0, 0, 1, 1], [], []>} : vector<18x98xf32>, vector<98x16xf32>, vector<18x16xf32> -> vector<18x16xf32>
    %c0_11 = arith.constant 0 : index
    %c0_12 = arith.constant 0 : index
    %c0_13 = arith.constant 0 : index
    %12 = vector.load %arg5[%c0_11, %c0_12, %c0_13] : memref<9x16x32xf32, #tpu.memory_space<vmem>>, vector<1x16x32xf32>
    %13 = vector.shape_cast %12 : vector<1x16x32xf32> to vector<16x32xf32>
    %cst_14 = arith.constant dense<0.000000e+00> : vector<18x32xf32>
    %14 = tpu.matmul %11, %13, %cst_14 {dimension_numbers = #tpu.dot_dimension_numbers<[1], [0], [0], [1], [0, 0, 1, 1], [], []>} : vector<18x16xf32>, vector<16x32xf32>, vector<18x32xf32> -> vector<18x32xf32>
    %15 = arith.addf %8, %14 : vector<18x32xf32>
    %c1 = arith.constant 1 : index
    %c0_15 = arith.constant 0 : index
    %c0_16 = arith.constant 0 : index
    %16 = vector.load %arg4[%c1, %c0_15, %c0_16] : memref<9x18x98xf32, #tpu.memory_space<vmem>>, vector<1x18x98xf32>
    %17 = vector.shape_cast %16 : vector<1x18x98xf32> to vector<18x98xf32>
    %cst_17 = arith.constant dense<0.000000e+00> : vector<18x16xf32>
    %18 = tpu.matmul %17, %7, %cst_17 {dimension_numbers = #tpu.dot_dimension_numbers<[1], [0], [0], [1], [0, 0, 1, 1], [], []>} : vector<18x98xf32>, vector<98x16xf32>, vector<18x16xf32> -> vector<18x16xf32>
    %c1_18 = arith.constant 1 : index
    %c0_19 = arith.constant 0 : index
    %c0_20 = arith.constant 0 : index
    %19 = vector.load %arg5[%c1_18, %c0_19, %c0_20] : memref<9x16x32xf32, #tpu.memory_space<vmem>>, vector<1x16x32xf32>
    %20 = vector.shape_cast %19 : vector<1x16x32xf32> to vector<16x32xf32>
    %cst_21 = arith.constant dense<0.000000e+00> : vector<18x32xf32>
    %21 = tpu.matmul %18, %20, %cst_21 {dimension_numbers = #tpu.dot_dimension_numbers<[1], [0], [0], [1], [0, 0, 1, 1], [], []>} : vector<18x16xf32>, vector<16x32xf32>, vector<18x32xf32> -> vector<18x32xf32>
    %22 = arith.addf %15, %21 : vector<18x32xf32>
    %c2 = arith.constant 2 : index
    %c0_22 = arith.constant 0 : index
    %c0_23 = arith.constant 0 : index
    %23 = vector.load %arg4[%c2, %c0_22, %c0_23] : memref<9x18x98xf32, #tpu.memory_space<vmem>>, vector<1x18x98xf32>
    %24 = vector.shape_cast %23 : vector<1x18x98xf32> to vector<18x98xf32>
    %cst_24 = arith.constant dense<0.000000e+00> : vector<18x16xf32>
    %25 = tpu.matmul %24, %7, %cst_24 {dimension_numbers = #tpu.dot_dimension_numbers<[1], [0], [0], [1], [0, 0, 1, 1], [], []>} : vector<18x98xf32>, vector<98x16xf32>, vector<18x16xf32> -> vector<18x16xf32>
    %c2_25 = arith.constant 2 : index
    %c0_26 = arith.constant 0 : index
    %c0_27 = arith.constant 0 : index
    %26 = vector.load %arg5[%c2_25, %c0_26, %c0_27] : memref<9x16x32xf32, #tpu.memory_space<vmem>>, vector<1x16x32xf32>
    %27 = vector.shape_cast %26 : vector<1x16x32xf32> to vector<16x32xf32>
    %cst_28 = arith.constant dense<0.000000e+00> : vector<18x32xf32>
    %28 = tpu.matmul %25, %27, %cst_28 {dimension_numbers = #tpu.dot_dimension_numbers<[1], [0], [0], [1], [0, 0, 1, 1], [], []>} : vector<18x16xf32>, vector<16x32xf32>, vector<18x32xf32> -> vector<18x32xf32>
    %29 = arith.addf %22, %28 : vector<18x32xf32>
    %c3 = arith.constant 3 : index
    %c0_29 = arith.constant 0 : index
    %c0_30 = arith.constant 0 : index
    %30 = vector.load %arg4[%c3, %c0_29, %c0_30] : memref<9x18x98xf32, #tpu.memory_space<vmem>>, vector<1x18x98xf32>
    %31 = vector.shape_cast %30 : vector<1x18x98xf32> to vector<18x98xf32>
    %cst_31 = arith.constant dense<0.000000e+00> : vector<18x16xf32>
    %32 = tpu.matmul %31, %7, %cst_31 {dimension_numbers = #tpu.dot_dimension_numbers<[1], [0], [0], [1], [0, 0, 1, 1], [], []>} : vector<18x98xf32>, vector<98x16xf32>, vector<18x16xf32> -> vector<18x16xf32>
    %c3_32 = arith.constant 3 : index
    %c0_33 = arith.constant 0 : index
    %c0_34 = arith.constant 0 : index
    %33 = vector.load %arg5[%c3_32, %c0_33, %c0_34] : memref<9x16x32xf32, #tpu.memory_space<vmem>>, vector<1x16x32xf32>
    %34 = vector.shape_cast %33 : vector<1x16x32xf32> to vector<16x32xf32>
    %cst_35 = arith.constant dense<0.000000e+00> : vector<18x32xf32>
    %35 = tpu.matmul %32, %34, %cst_35 {dimension_numbers = #tpu.dot_dimension_numbers<[1], [0], [0], [1], [0, 0, 1, 1], [], []>} : vector<18x16xf32>, vector<16x32xf32>, vector<18x32xf32> -> vector<18x32xf32>
    %36 = arith.addf %29, %35 : vector<18x32xf32>
    %c4 = arith.constant 4 : index
    %c0_36 = arith.constant 0 : index
    %c0_37 = arith.constant 0 : index
    %37 = vector.load %arg4[%c4, %c0_36, %c0_37] : memref<9x18x98xf32, #tpu.memory_space<vmem>>, vector<1x18x98xf32>
    %38 = vector.shape_cast %37 : vector<1x18x98xf32> to vector<18x98xf32>
    %cst_38 = arith.constant dense<0.000000e+00> : vector<18x16xf32>
    %39 = tpu.matmul %38, %7, %cst_38 {dimension_numbers = #tpu.dot_dimension_numbers<[1], [0], [0], [1], [0, 0, 1, 1], [], []>} : vector<18x98xf32>, vector<98x16xf32>, vector<18x16xf32> -> vector<18x16xf32>
    %c4_39 = arith.constant 4 : index
    %c0_40 = arith.constant 0 : index
    %c0_41 = arith.constant 0 : index
    %40 = vector.load %arg5[%c4_39, %c0_40, %c0_41] : memref<9x16x32xf32, #tpu.memory_space<vmem>>, vector<1x16x32xf32>
    %41 = vector.shape_cast %40 : vector<1x16x32xf32> to vector<16x32xf32>
    %cst_42 = arith.constant dense<0.000000e+00> : vector<18x32xf32>
    %42 = tpu.matmul %39, %41, %cst_42 {dimension_numbers = #tpu.dot_dimension_numbers<[1], [0], [0], [1], [0, 0, 1, 1], [], []>} : vector<18x16xf32>, vector<16x32xf32>, vector<18x32xf32> -> vector<18x32xf32>
    %43 = arith.addf %36, %42 : vector<18x32xf32>
    %c5 = arith.constant 5 : index
    %c0_43 = arith.constant 0 : index
    %c0_44 = arith.constant 0 : index
    %44 = vector.load %arg4[%c5, %c0_43, %c0_44] : memref<9x18x98xf32, #tpu.memory_space<vmem>>, vector<1x18x98xf32>
    %45 = vector.shape_cast %44 : vector<1x18x98xf32> to vector<18x98xf32>
    %cst_45 = arith.constant dense<0.000000e+00> : vector<18x16xf32>
    %46 = tpu.matmul %45, %7, %cst_45 {dimension_numbers = #tpu.dot_dimension_numbers<[1], [0], [0], [1], [0, 0, 1, 1], [], []>} : vector<18x98xf32>, vector<98x16xf32>, vector<18x16xf32> -> vector<18x16xf32>
    %c5_46 = arith.constant 5 : index
    %c0_47 = arith.constant 0 : index
    %c0_48 = arith.constant 0 : index
    %47 = vector.load %arg5[%c5_46, %c0_47, %c0_48] : memref<9x16x32xf32, #tpu.memory_space<vmem>>, vector<1x16x32xf32>
    %48 = vector.shape_cast %47 : vector<1x16x32xf32> to vector<16x32xf32>
    %cst_49 = arith.constant dense<0.000000e+00> : vector<18x32xf32>
    %49 = tpu.matmul %46, %48, %cst_49 {dimension_numbers = #tpu.dot_dimension_numbers<[1], [0], [0], [1], [0, 0, 1, 1], [], []>} : vector<18x16xf32>, vector<16x32xf32>, vector<18x32xf32> -> vector<18x32xf32>
    %50 = arith.addf %43, %49 : vector<18x32xf32>
    %c6 = arith.constant 6 : index
    %c0_50 = arith.constant 0 : index
    %c0_51 = arith.constant 0 : index
    %51 = vector.load %arg4[%c6, %c0_50, %c0_51] : memref<9x18x98xf32, #tpu.memory_space<vmem>>, vector<1x18x98xf32>
    %52 = vector.shape_cast %51 : vector<1x18x98xf32> to vector<18x98xf32>
    %cst_52 = arith.constant dense<0.000000e+00> : vector<18x16xf32>
    %53 = tpu.matmul %52, %7, %cst_52 {dimension_numbers = #tpu.dot_dimension_numbers<[1], [0], [0], [1], [0, 0, 1, 1], [], []>} : vector<18x98xf32>, vector<98x16xf32>, vector<18x16xf32> -> vector<18x16xf32>
    %c6_53 = arith.constant 6 : index
    %c0_54 = arith.constant 0 : index
    %c0_55 = arith.constant 0 : index
    %54 = vector.load %arg5[%c6_53, %c0_54, %c0_55] : memref<9x16x32xf32, #tpu.memory_space<vmem>>, vector<1x16x32xf32>
    %55 = vector.shape_cast %54 : vector<1x16x32xf32> to vector<16x32xf32>
    %cst_56 = arith.constant dense<0.000000e+00> : vector<18x32xf32>
    %56 = tpu.matmul %53, %55, %cst_56 {dimension_numbers = #tpu.dot_dimension_numbers<[1], [0], [0], [1], [0, 0, 1, 1], [], []>} : vector<18x16xf32>, vector<16x32xf32>, vector<18x32xf32> -> vector<18x32xf32>
    %57 = arith.addf %50, %56 : vector<18x32xf32>
    %c7 = arith.constant 7 : index
    %c0_57 = arith.constant 0 : index
    %c0_58 = arith.constant 0 : index
    %58 = vector.load %arg4[%c7, %c0_57, %c0_58] : memref<9x18x98xf32, #tpu.memory_space<vmem>>, vector<1x18x98xf32>
    %59 = vector.shape_cast %58 : vector<1x18x98xf32> to vector<18x98xf32>
    %cst_59 = arith.constant dense<0.000000e+00> : vector<18x16xf32>
    %60 = tpu.matmul %59, %7, %cst_59 {dimension_numbers = #tpu.dot_dimension_numbers<[1], [0], [0], [1], [0, 0, 1, 1], [], []>} : vector<18x98xf32>, vector<98x16xf32>, vector<18x16xf32> -> vector<18x16xf32>
    %c7_60 = arith.constant 7 : index
    %c0_61 = arith.constant 0 : index
    %c0_62 = arith.constant 0 : index
    %61 = vector.load %arg5[%c7_60, %c0_61, %c0_62] : memref<9x16x32xf32, #tpu.memory_space<vmem>>, vector<1x16x32xf32>
    %62 = vector.shape_cast %61 : vector<1x16x32xf32> to vector<16x32xf32>
    %cst_63 = arith.constant dense<0.000000e+00> : vector<18x32xf32>
    %63 = tpu.matmul %60, %62, %cst_63 {dimension_numbers = #tpu.dot_dimension_numbers<[1], [0], [0], [1], [0, 0, 1, 1], [], []>} : vector<18x16xf32>, vector<16x32xf32>, vector<18x32xf32> -> vector<18x32xf32>
    %64 = arith.addf %57, %63 : vector<18x32xf32>
    %c8 = arith.constant 8 : index
    %c0_64 = arith.constant 0 : index
    %c0_65 = arith.constant 0 : index
    %65 = vector.load %arg4[%c8, %c0_64, %c0_65] : memref<9x18x98xf32, #tpu.memory_space<vmem>>, vector<1x18x98xf32>
    %66 = vector.shape_cast %65 : vector<1x18x98xf32> to vector<18x98xf32>
    %cst_66 = arith.constant dense<0.000000e+00> : vector<18x16xf32>
    %67 = tpu.matmul %66, %7, %cst_66 {dimension_numbers = #tpu.dot_dimension_numbers<[1], [0], [0], [1], [0, 0, 1, 1], [], []>} : vector<18x98xf32>, vector<98x16xf32>, vector<18x16xf32> -> vector<18x16xf32>
    %c8_67 = arith.constant 8 : index
    %c0_68 = arith.constant 0 : index
    %c0_69 = arith.constant 0 : index
    %68 = vector.load %arg5[%c8_67, %c0_68, %c0_69] : memref<9x16x32xf32, #tpu.memory_space<vmem>>, vector<1x16x32xf32>
    %69 = vector.shape_cast %68 : vector<1x16x32xf32> to vector<16x32xf32>
    %cst_70 = arith.constant dense<0.000000e+00> : vector<18x32xf32>
    %70 = tpu.matmul %67, %69, %cst_70 {dimension_numbers = #tpu.dot_dimension_numbers<[1], [0], [0], [1], [0, 0, 1, 1], [], []>} : vector<18x16xf32>, vector<16x32xf32>, vector<18x32xf32> -> vector<18x32xf32>
    %71 = arith.addf %64, %70 : vector<18x32xf32>
    %c0_71 = arith.constant 0 : index
    %c0_72 = arith.constant 0 : index
    %72 = vector.load %arg6[%c0_71, %c0_72] : memref<1x32xf32, #tpu.memory_space<vmem>>, vector<1x32xf32>
    %73 = vector.broadcast %72 : vector<1x32xf32> to vector<18x32xf32>
    %74 = arith.addf %71, %73 : vector<18x32xf32>
    %cst_73 = arith.constant 0.000000e+00 : f32
    %75 = vector.broadcast %cst_73 : f32 to vector<18x32xf32>
    %76 = arith.maximumf %74, %75 : vector<18x32xf32>
    %c0_74 = arith.constant 0 : index
    %c0_75 = arith.constant 0 : index
    %77 = vector.load %arg13[%c0_74, %c0_75] : memref<18x32xf32, #tpu.memory_space<vmem>>, vector<18x32xf32>
    tpu.vector_store %arg13[%c0_74, %c0_75], %76 {strides = array<i32>} : memref<18x32xf32, #tpu.memory_space<vmem>>, vector<18x32xf32>,
    %c0_76 = arith.constant 0 : index
    %c0_77 = arith.constant 0 : index
    %78 = vector.load %arg1[%c0_76, %c0_77] : memref<2x2xf32, #tpu.memory_space<vmem>>, vector<2x2xf32>
    %c0_78 = arith.constant 0 : index
    %c0_79 = arith.constant 0 : index
    %79 = vector.load %arg8[%c0_78, %c0_79] : memref<2x128xf32, #tpu.memory_space<vmem>>, vector<2x128xf32>
    %cst_80 = arith.constant dense<0.000000e+00> : vector<2x128xf32>
    %80 = tpu.matmul %78, %79, %cst_80 {dimension_numbers = #tpu.dot_dimension_numbers<[1], [0], [0], [1], [0, 0, 1, 1], [], []>} : vector<2x2xf32>, vector<2x128xf32>, vector<2x128xf32> -> vector<2x128xf32>
    %c0_81 = arith.constant 0 : index
    %c0_82 = arith.constant 0 : index
    %81 = vector.load %arg13[%c0_81, %c0_82] : memref<18x32xf32, #tpu.memory_space<vmem>>, vector<2x32xf32>
    %c0_83 = arith.constant 0 : index
    %c0_84 = arith.constant 0 : index
    %c0_85 = arith.constant 0 : index
    %82 = vector.load %arg7[%c0_83, %c0_84, %c0_85] : memref<9x32x128xf32, #tpu.memory_space<vmem>>, vector<1x32x128xf32>
    %83 = vector.shape_cast %82 : vector<1x32x128xf32> to vector<32x128xf32>
    %cst_86 = arith.constant dense<0.000000e+00> : vector<2x128xf32>
    %84 = tpu.matmul %81, %83, %cst_86 {dimension_numbers = #tpu.dot_dimension_numbers<[1], [0], [0], [1], [0, 0, 1, 1], [], []>} : vector<2x32xf32>, vector<32x128xf32>, vector<2x128xf32> -> vector<2x128xf32>
    %85 = arith.addf %80, %84 : vector<2x128xf32>
    %c2_87 = arith.constant 2 : index
    %c0_88 = arith.constant 0 : index
    %86 = vector.load %arg13[%c2_87, %c0_88] : memref<18x32xf32, #tpu.memory_space<vmem>>, vector<2x32xf32>
    %c1_89 = arith.constant 1 : index
    %c0_90 = arith.constant 0 : index
    %c0_91 = arith.constant 0 : index
    %87 = vector.load %arg7[%c1_89, %c0_90, %c0_91] : memref<9x32x128xf32, #tpu.memory_space<vmem>>, vector<1x32x128xf32>
    %88 = vector.shape_cast %87 : vector<1x32x128xf32> to vector<32x128xf32>
    %cst_92 = arith.constant dense<0.000000e+00> : vector<2x128xf32>
    %89 = tpu.matmul %86, %88, %cst_92 {dimension_numbers = #tpu.dot_dimension_numbers<[1], [0], [0], [1], [0, 0, 1, 1], [], []>} : vector<2x32xf32>, vector<32x128xf32>, vector<2x128xf32> -> vector<2x128xf32>
    %90 = arith.addf %85, %89 : vector<2x128xf32>
    %c4_93 = arith.constant 4 : index
    %c0_94 = arith.constant 0 : index
    %91 = vector.load %arg13[%c4_93, %c0_94] : memref<18x32xf32, #tpu.memory_space<vmem>>, vector<2x32xf32>
    %c2_95 = arith.constant 2 : index
    %c0_96 = arith.constant 0 : index
    %c0_97 = arith.constant 0 : index
    %92 = vector.load %arg7[%c2_95, %c0_96, %c0_97] : memref<9x32x128xf32, #tpu.memory_space<vmem>>, vector<1x32x128xf32>
    %93 = vector.shape_cast %92 : vector<1x32x128xf32> to vector<32x128xf32>
    %cst_98 = arith.constant dense<0.000000e+00> : vector<2x128xf32>
    %94 = tpu.matmul %91, %93, %cst_98 {dimension_numbers = #tpu.dot_dimension_numbers<[1], [0], [0], [1], [0, 0, 1, 1], [], []>} : vector<2x32xf32>, vector<32x128xf32>, vector<2x128xf32> -> vector<2x128xf32>
    %95 = arith.addf %90, %94 : vector<2x128xf32>
    %c6_99 = arith.constant 6 : index
    %c0_100 = arith.constant 0 : index
    %96 = vector.load %arg13[%c6_99, %c0_100] : memref<18x32xf32, #tpu.memory_space<vmem>>, vector<2x32xf32>
    %c3_101 = arith.constant 3 : index
    %c0_102 = arith.constant 0 : index
    %c0_103 = arith.constant 0 : index
    %97 = vector.load %arg7[%c3_101, %c0_102, %c0_103] : memref<9x32x128xf32, #tpu.memory_space<vmem>>, vector<1x32x128xf32>
    %98 = vector.shape_cast %97 : vector<1x32x128xf32> to vector<32x128xf32>
    %cst_104 = arith.constant dense<0.000000e+00> : vector<2x128xf32>
    %99 = tpu.matmul %96, %98, %cst_104 {dimension_numbers = #tpu.dot_dimension_numbers<[1], [0], [0], [1], [0, 0, 1, 1], [], []>} : vector<2x32xf32>, vector<32x128xf32>, vector<2x128xf32> -> vector<2x128xf32>
    %100 = arith.addf %95, %99 : vector<2x128xf32>
    %c8_105 = arith.constant 8 : index
    %c0_106 = arith.constant 0 : index
    %101 = vector.load %arg13[%c8_105, %c0_106] : memref<18x32xf32, #tpu.memory_space<vmem>>, vector<2x32xf32>
    %c4_107 = arith.constant 4 : index
    %c0_108 = arith.constant 0 : index
    %c0_109 = arith.constant 0 : index
    %102 = vector.load %arg7[%c4_107, %c0_108, %c0_109] : memref<9x32x128xf32, #tpu.memory_space<vmem>>, vector<1x32x128xf32>
    %103 = vector.shape_cast %102 : vector<1x32x128xf32> to vector<32x128xf32>
    %cst_110 = arith.constant dense<0.000000e+00> : vector<2x128xf32>
    %104 = tpu.matmul %101, %103, %cst_110 {dimension_numbers = #tpu.dot_dimension_numbers<[1], [0], [0], [1], [0, 0, 1, 1], [], []>} : vector<2x32xf32>, vector<32x128xf32>, vector<2x128xf32> -> vector<2x128xf32>
    %105 = arith.addf %100, %104 : vector<2x128xf32>
    %c10 = arith.constant 10 : index
    %c0_111 = arith.constant 0 : index
    %106 = vector.load %arg13[%c10, %c0_111] : memref<18x32xf32, #tpu.memory_space<vmem>>, vector<2x32xf32>
    %c5_112 = arith.constant 5 : index
    %c0_113 = arith.constant 0 : index
    %c0_114 = arith.constant 0 : index
    %107 = vector.load %arg7[%c5_112, %c0_113, %c0_114] : memref<9x32x128xf32, #tpu.memory_space<vmem>>, vector<1x32x128xf32>
    %108 = vector.shape_cast %107 : vector<1x32x128xf32> to vector<32x128xf32>
    %cst_115 = arith.constant dense<0.000000e+00> : vector<2x128xf32>
    %109 = tpu.matmul %106, %108, %cst_115 {dimension_numbers = #tpu.dot_dimension_numbers<[1], [0], [0], [1], [0, 0, 1, 1], [], []>} : vector<2x32xf32>, vector<32x128xf32>, vector<2x128xf32> -> vector<2x128xf32>
    %110 = arith.addf %105, %109 : vector<2x128xf32>
    %c12 = arith.constant 12 : index
    %c0_116 = arith.constant 0 : index
    %111 = vector.load %arg13[%c12, %c0_116] : memref<18x32xf32, #tpu.memory_space<vmem>>, vector<2x32xf32>
    %c6_117 = arith.constant 6 : index
    %c0_118 = arith.constant 0 : index
    %c0_119 = arith.constant 0 : index
    %112 = vector.load %arg7[%c6_117, %c0_118, %c0_119] : memref<9x32x128xf32, #tpu.memory_space<vmem>>, vector<1x32x128xf32>
    %113 = vector.shape_cast %112 : vector<1x32x128xf32> to vector<32x128xf32>
    %cst_120 = arith.constant dense<0.000000e+00> : vector<2x128xf32>
    %114 = tpu.matmul %111, %113, %cst_120 {dimension_numbers = #tpu.dot_dimension_numbers<[1], [0], [0], [1], [0, 0, 1, 1], [], []>} : vector<2x32xf32>, vector<32x128xf32>, vector<2x128xf32> -> vector<2x128xf32>
    %115 = arith.addf %110, %114 : vector<2x128xf32>
    %c14 = arith.constant 14 : index
    %c0_121 = arith.constant 0 : index
    %116 = vector.load %arg13[%c14, %c0_121] : memref<18x32xf32, #tpu.memory_space<vmem>>, vector<2x32xf32>
    %c7_122 = arith.constant 7 : index
    %c0_123 = arith.constant 0 : index
    %c0_124 = arith.constant 0 : index
    %117 = vector.load %arg7[%c7_122, %c0_123, %c0_124] : memref<9x32x128xf32, #tpu.memory_space<vmem>>, vector<1x32x128xf32>
    %118 = vector.shape_cast %117 : vector<1x32x128xf32> to vector<32x128xf32>
    %cst_125 = arith.constant dense<0.000000e+00> : vector<2x128xf32>
    %119 = tpu.matmul %116, %118, %cst_125 {dimension_numbers = #tpu.dot_dimension_numbers<[1], [0], [0], [1], [0, 0, 1, 1], [], []>} : vector<2x32xf32>, vector<32x128xf32>, vector<2x128xf32> -> vector<2x128xf32>
    %120 = arith.addf %115, %119 : vector<2x128xf32>
    %c16 = arith.constant 16 : index
    %c0_126 = arith.constant 0 : index
    %121 = vector.load %arg13[%c16, %c0_126] : memref<18x32xf32, #tpu.memory_space<vmem>>, vector<2x32xf32>
    %c8_127 = arith.constant 8 : index
    %c0_128 = arith.constant 0 : index
    %c0_129 = arith.constant 0 : index
    %122 = vector.load %arg7[%c8_127, %c0_128, %c0_129] : memref<9x32x128xf32, #tpu.memory_space<vmem>>, vector<1x32x128xf32>
    %123 = vector.shape_cast %122 : vector<1x32x128xf32> to vector<32x128xf32>
    %cst_130 = arith.constant dense<0.000000e+00> : vector<2x128xf32>
    %124 = tpu.matmul %121, %123, %cst_130 {dimension_numbers = #tpu.dot_dimension_numbers<[1], [0], [0], [1], [0, 0, 1, 1], [], []>} : vector<2x32xf32>, vector<32x128xf32>, vector<2x128xf32> -> vector<2x128xf32>
    %125 = arith.addf %120, %124 : vector<2x128xf32>
    %c0_131 = arith.constant 0 : index
    %c0_132 = arith.constant 0 : index
    %126 = vector.load %arg9[%c0_131, %c0_132] : memref<1x128xf32, #tpu.memory_space<vmem>>, vector<1x128xf32>
    %127 = vector.broadcast %126 : vector<1x128xf32> to vector<2x128xf32>
    %128 = arith.addf %125, %127 : vector<2x128xf32>
    %cst_133 = arith.constant 0.000000e+00 : f32
    %129 = vector.broadcast %cst_133 : f32 to vector<2x128xf32>
    %130 = arith.maximumf %128, %129 : vector<2x128xf32>
    %c0_134 = arith.constant 0 : index
    %c0_135 = arith.constant 0 : index
    %131 = vector.load %arg10[%c0_134, %c0_135] : memref<128x16xf32, #tpu.memory_space<vmem>>, vector<128x16xf32>
    %cst_136 = arith.constant dense<0.000000e+00> : vector<2x16xf32>
    %132 = tpu.matmul %130, %131, %cst_136 {dimension_numbers = #tpu.dot_dimension_numbers<[1], [0], [0], [1], [0, 0, 1, 1], [], []>} : vector<2x128xf32>, vector<128x16xf32>, vector<2x16xf32> -> vector<2x16xf32>
    %c0_137 = arith.constant 0 : index
    %c0_138 = arith.constant 0 : index
    %133 = vector.load %arg11[%c0_137, %c0_138] : memref<1x16xf32, #tpu.memory_space<vmem>>, vector<1x16xf32>
    %134 = vector.broadcast %133 : vector<1x16xf32> to vector<2x16xf32>
    %135 = arith.addf %132, %134 : vector<2x16xf32>
    %c0_139 = arith.constant 0 : index
    %c0_140 = arith.constant 0 : index
    %136 = vector.load %arg12[%c0_139, %c0_140] : memref<2x16xf32, #tpu.memory_space<vmem>>, vector<2x16xf32>
    tpu.vector_store %arg12[%c0_139, %c0_140], %135 {strides = array<i32>} : memref<2x16xf32, #tpu.memory_space<vmem>>, vector<2x16xf32>,
    return
  }
}

</mosaic_0001>

<bundles_post_ra>
// kernel: dqn_forward.1
= control target key start
LH: loop header
LB: loop body
LE: loop exit
PB: predicated region body
PF: predicated region fallthrough
CT: control target
= control target key end

     0   :  { %vm106_vm0 = vcmask 1042432   ;;  %v3953_v1 = vmov 0.0   ;;  %vm3954_vm1 = vmmov 0   ;;  %vm66_vm2 = vcmask 220160   ;;  %s4972_s0 = inlined_call_operand.vmem [shape: f32[98,27], index: 0, kind: input, shape index: {}]   ;;  %s4973_s1 = inlined_call_operand.vmem [shape: f32[2,2], index: 1, kind: input, shape index: {}]   ;;  %s4974_s2 = inlined_call_operand.vmem [shape: f32[27,16], index: 2, kind: input, shape index: {}]   ;;  %s4975_s3 = inlined_call_operand.vmem [shape: f32[1,16], index: 3, kind: input, shape index: {}]   ;;  %s4976_s4 = inlined_call_operand.vmem [shape: f32[9,18,98], index: 4, kind: input, shape index: {}]   ;;  %s4977_s5 = inlined_call_operand.vmem [shape: f32[9,16,32], index: 5, kind: input, shape index: {}]   ;;  %s4978_s6 = inlined_call_operand.vmem [shape: f32[1,32], index: 6, kind: input, shape index: {}]   ;;  %s4979_s7 = inlined_call_operand.vmem [shape: f32[9,32,128], index: 7, kind: input, shape index: {}]   ;;  %s4980_s8 = inlined_call_operand.vmem [shape: f32[2,128], index: 8, kind: input, shape index: {}]   ;;  %s4981_s9 = inlined_call_operand.vmem [shape: f32[1,128], index: 9, kind: input, shape index: {}]   ;;  %s4982_s10 = inlined_call_operand.vmem [shape: f32[128,16], index: 10, kind: input, shape index: {}]   ;;  %s4983_s11 = inlined_call_operand.vmem [shape: f32[1,16], index: 11, kind: input, shape index: {}]   ;;  %s4984_s12 = inlined_call_operand.hbm [shape: f32[2,16], index: 12, kind: output, shape index: {}]  }
   0x1   :  { %v58_v0 = vld [vmem:[%s4974_s2 + $0x18] sm:$0x7]  ;;  %3310 = vmatprep.subr.mxu0 %v3953_v1  ;;  %v57_v2 = vld [vmem:[%s4974_s2 + $0x10] sm:$0xff]  ;;  %3357 = vmatprep.subr.mxu1 %v3953_v1  ;;  %v56_v3 = vld [vmem:[%s4974_s2 + $0x8] sm:$0xff] }
   0x2   :  { %3311 = vmatpush3.msk.msra.mxu0 %vm106_vm0, %v58_v0  ;;  %3318 = vmatprep.mubr.msk.f32.mxu0 %vm3954_vm1, %v3953_v1  ;;  %v55_v4 = vld [vmem:[%s4974_s2] sm:$0xff] }
   0x3   :  { %3312 = vmatprep.subr.mxu0 %v3953_v1  ;;  %3383 = vmatprep.mubr.msk.f32.mxu1 %vm3954_vm1, %v3953_v1  ;;  %v42_v5 = vld [vmem:[%s4972_s0] sm:$0xff] }
   0x4   :  { %3313 = vmatpush3.msra.mxu0 %v57_v2 }
   0x5   :  { %3314 = vmatprep.subr.mxu0 %v3953_v1 }
   0x6   :  { %3315 = vmatpush3.msra.mxu0 %v56_v3 }
   0x7   :  { %17 = vsyncpa [#allocation4], 0  ;;  %3316 = vmatprep.subr.mxu0 %v3953_v1  ;;  %v43_v6 = vld [vmem:[%s4972_s0 + $0x8] sm:$0xff]  ;;  %v44_v7 = vld [vmem:[%s4972_s0 + $0x10] sm:$0xff]  ;;  %vm266_vm3 = vcmask 1041408   ;;  %vm256_vm4 = vcmask 801792  }
   0x8   :  { %3317 = vmatpush3.msra.mxu0 %v55_v4  ;;  %v45_v8 = vld [vmem:[%s4972_s0 + $0x18] sm:$0xff]  ;;  %v46_v9 = vld [vmem:[%s4972_s0 + $0x20] sm:$0xff]  ;;  %v47_v10 = vld [vmem:[%s4972_s0 + $0x28] sm:$0xff]  ;;  %vm448_vm5 = vcmask 130048   ;;  %vm1956_vm6 = vcmask 261120   ;;  %vm1959_vm7 = vcmask 254976  }
   0x9   :  { %3319 = vmatmul.mubr.msk.f32.vlgmr.msra.gmra.mxu0 %vm66_vm2, %v42_v5  ;;  %3453 = vmatprep.subr.mxu0 %v3953_v1  ;;  %v48_v11 = vld [vmem:[%s4972_s0 + $0x30] sm:$0xff]  ;;  %v49_v12 = vld [vmem:[%s4972_s0 + $0x38] sm:$0xff]  ;;  %v50_v13 = vld [vmem:[%s4972_s0 + $0x40] sm:$0xff]  ;;  %vm2041_vm8 = vcmask 15360   ;;  %s3955_s28 = smov [#allocation3]   ;;  %vm2860_vm9 = vcmask 123904  }
   0xa   :  { %3321 = vmatprep.mubr.msk.f32.mxu0 %vm3954_vm1, %v3953_v1  ;;  %v51_v14 = vld [vmem:[%s4972_s0 + $0x48] sm:$0xff]  ;;  %v52_v15 = vld [vmem:[%s4972_s0 + $0x50] sm:$0xff]  ;;  %v53_v16 = vld [vmem:[%s4972_s0 + $0x58] sm:$0xff]  ;;  %s2868_s29 = sshll.u32 %s3955_s28, 4  ;;  %s2869_s29 = int_to_ptr.vmem [resolvable:$true] %s2868_s29 }
   0xb   :  { %v54_v17 = vld [vmem:[%s4972_s0 + $0x60] sm:$0x3]  ;;  %s3931_s30 = scalar_lea.vmem %s2869_s29, 32  ;;  %p3936_p1 = scmp.lt.s32.totalorder %s2869_s29, %s2869_s29 }
   0xc   :  { %v2876_v42 = vld [vmem:[%s4975_s3] ss:$0 sm:$0xff]  ;;  %p3932_p0 = scmp.ne.s32.totalorder %s2869_s29, %s3931_s30  ;;  %p3937_p2 = scmp.lt.s32.totalorder %s3931_s30, %s3931_s30 }
   0xd   :  { %3322 = vmatmul.mubr.msk.f32.gmra.mxu0 %vm66_vm2, %v43_v6 }
   0xe   :  { %3324 = vmatprep.mubr.msk.f32.mxu0 %vm3954_vm1, %v3953_v1  ;;  %p3938_p3 = por %p3937_p2, %p3936_p1 }
  0x10   :  { %p3939_p4 = pnand %p3938_p3, %p3932_p0 }
  0x11   :  { %3325 = vmatmul.mubr.msk.f32.gmra.mxu0 %vm66_vm2, %v44_v7 }
  0x12   :  { %3327 = vmatprep.mubr.msk.f32.mxu0 %vm3954_vm1, %v3953_v1 }
  0x15   :  { %3328 = vmatmul.mubr.msk.f32.gmra.mxu0 %vm66_vm2, %v45_v8  ;;  %v253_v8 = vld [vmem:[%s4976_s4] sm:$0xff] }
  0x16   :  { %3330 = vmatprep.mubr.msk.f32.mxu0 %vm3954_vm1, %v3953_v1 }
  0x19   :  { %3331 = vmatmul.mubr.msk.f32.gmra.mxu0 %vm66_vm2, %v46_v9  ;;  %v2910_v9 = vld [vmem:[%s4976_s4 + $0x30] sm:$0xff] }
  0x1a   :  { %3333 = vmatprep.mubr.msk.f32.mxu0 %vm3954_vm1, %v3953_v1 }
  0x1d   :  { %3334 = vmatmul.mubr.msk.f32.gmra.mxu0 %vm66_vm2, %v47_v10  ;;  %v254_v10 = vld [vmem:[%s4976_s4 + $0x8] sm:$0xff] }
  0x1e   :  { %3336 = vmatprep.mubr.msk.f32.mxu0 %vm3954_vm1, %v3953_v1 }
  0x21   :  { %3337 = vmatmul.mubr.msk.f32.gmra.mxu0 %vm66_vm2, %v48_v11  ;;  %v2911_v11 = vld [vmem:[%s4976_s4 + $0x38] sm:$0xff] }
  0x22   :  { %3339 = vmatprep.mubr.msk.f32.mxu0 %vm3954_vm1, %v3953_v1 }
  0x25   :  { %3340 = vmatmul.mubr.msk.f32.gmra.mxu0 %vm66_vm2, %v49_v12  ;;  %v255_v12 = vld [vmem:[%s4976_s4 + $0x10] sm:$0x3] }
  0x26   :  { %3342 = vmatprep.mubr.msk.f32.mxu0 %vm3954_vm1, %v3953_v1 }
  0x29   :  { %3343 = vmatmul.mubr.msk.f32.gmra.mxu0 %vm66_vm2, %v50_v13  ;;  %v2912_v13 = vld [vmem:[%s4976_s4 + $0x40] sm:$0x3] }
  0x2a   :  { %3345 = vmatprep.mubr.msk.f32.mxu0 %vm3954_vm1, %v3953_v1 }
  0x2d   :  { %3346 = vmatmul.mubr.msk.f32.gmra.mxu0 %vm66_vm2, %v51_v14  ;;  %v2895_v14 = vld [vmem:[%s4976_s4 + $0x18] sm:$0xff] }
  0x2e   :  { %3348 = vmatprep.mubr.msk.f32.mxu0 %vm3954_vm1, %v3953_v1 }
  0x31   :  { %3349 = vmatmul.mubr.msk.f32.gmra.mxu0 %vm66_vm2, %v52_v15  ;;  %v2896_v15 = vld [vmem:[%s4976_s4 + $0x20] sm:$0xff] }
  0x32   :  { %3351 = vmatprep.mubr.msk.f32.mxu0 %vm3954_vm1, %v3953_v1 }
  0x35   :  { %3352 = vmatmul.mubr.msk.f32.gmra.mxu0 %vm66_vm2, %v53_v16  ;;  %v2897_v16 = vld [vmem:[%s4976_s4 + $0x28] sm:$0x3] }
  0x36   :  { %3354 = vmatprep.mubr.msk.f32.mxu0 %vm3954_vm1, %v3953_v1 }
  0x39   :  { %3355 = vmatmul.mubr.msk.f32.gmra.mxu0 %vm66_vm2, %v54_v17  ;;  %v2903_v17 = vld [vmem:[%s4977_s5 + $0x18] sm:$0xff] }
  0x3a   :  { %3479 = vmatprep.mubr.msk.f32.mxu0 %vm3954_vm1, %v3953_v1 }
  0xc9   :  { %v4121_v18 = vpop.f32.mrf.mxu0 }
  0xca   :  { %v177_v4 = vadd.f32 %v2876_v42, %v4121_v18  ;;  %v2902_v18 = vld [vmem:[%s4977_s5 + $0x10] sm:$0xff] }
  0xcb   :  { %v3320_v19 = vpop.f32.mrf.mxu0 }
  0xcc   :  { %v4203_v7 = vmax.f32 %v177_v4, 0.0 }
  0xcd   :  { %v4123_v20 = vpop.f32.mrf.mxu0 }
  0xce   :  { %v182_v2 = vadd.f32 %v2876_v42, %v4123_v20 }
  0xcf   :  { %v3323_v21 = vpop.f32.mrf.mxu0 }
  0xd0   :  { %v4197_v6 = vmax.f32 %v182_v2, 0.0 }
  0xd1   :  { %v4125_v22 = vpop.f32.mrf.mxu0 }
  0xd2   :  { %v187_v63 = vadd.f32 %v2876_v42, %v4125_v22 }
  0xd3   :  { %v3326_v23 = vpop.f32.mrf.mxu0 }
  0xd4   :  { %v4191_v5 = vmax.f32 %v187_v63, 0.0 }
  0xd5   :  { %v191_v24 = vpop.f32.mrf.mxu0 }
  0xd6   :  { %v192_v61 = vadd.f32 %v2876_v42, %v191_v24 }
  0xd7   :  { %v3329_v25 = vpop.f32.mrf.mxu0 }
  0xd8   :  { %v4184_v3 = vmax.f32 %v192_v61, 0.0 }
  0xd9   :  { %v196_v26 = vpop.f32.mrf.mxu0 }
  0xda   :  { %v197_v59 = vadd.f32 %v2876_v42, %v196_v26 }
  0xdb   :  { %v3332_v27 = vpop.f32.mrf.mxu0 }
  0xdc   :  { %v4177_v0 = vmax.f32 %v197_v59, 0.0 }
  0xdd   :  { %v201_v28 = vpop.f32.mrf.mxu0 }
  0xde   :  { %v202_v57 = vadd.f32 %v2876_v42, %v201_v28 }
  0xdf   :  { %v3335_v29 = vpop.f32.mrf.mxu0 }
  0xe0   :  { %v4170_v62 = vmax.f32 %v202_v57, 0.0 }
  0xe1   :  { %v206_v30 = vpop.f32.mrf.mxu0 }
  0xe2   :  { %v207_v55 = vadd.f32 %v2876_v42, %v206_v30 }
  0xe3   :  { %v3338_v31 = vpop.f32.mrf.mxu0 }
  0xe4   :  { %v4164_v60 = vmax.f32 %v207_v55, 0.0  ;;  %v351_v31 = vld [vmem:[%s4977_s5 + $0x8] sm:$0xff] }
  0xe5   :  { %v211_v32 = vpop.f32.mrf.mxu0 }
  0xe6   :  { %v212_v53 = vadd.f32 %v2876_v42, %v211_v32 }
  0xe7   :  { %v3341_v33 = vpop.f32.mrf.mxu0 }
  0xe8   :  { %v4158_v58 = vmax.f32 %v212_v53, 0.0  ;;  %v350_v33 = vld [vmem:[%s4977_s5] sm:$0xff] }
  0xe9   :  { %v216_v34 = vpop.f32.mrf.mxu0 }
  0xea   :  { %v217_v51 = vadd.f32 %v2876_v42, %v216_v34 }
  0xeb   :  { %v3344_v35 = vpop.f32.mrf.mxu0 }
  0xec   :  { %v4152_v56 = vmax.f32 %v217_v51, 0.0 }
  0xed   :  { %v221_v36 = vpop.f32.mrf.mxu0 }
  0xee   :  { %v222_v49 = vadd.f32 %v2876_v42, %v221_v36 }
  0xef   :  { %v3347_v37 = vpop.f32.mrf.mxu0 }
  0xf0   :  { %v4146_v54 = vmax.f32 %v222_v49, 0.0 }
  0xf1   :  { %v226_v38 = vpop.f32.mrf.mxu0 }
  0xf2   :  { %v227_v47 = vadd.f32 %v2876_v42, %v226_v38 }
  0xf3   :  { %v3350_v39 = vpop.f32.mrf.mxu0 }
  0xf4   :  { %v4140_v52 = vmax.f32 %v227_v47, 0.0  ;;  %v2918_v39 = vld [vmem:[%s4977_s5 + $0x28] sm:$0xff] }
  0xf5   :  { %v231_v40 = vpop.f32.mrf.mxu0 }
  0xf6   :  { %v232_v44 = vadd.f32 %v2876_v42, %v231_v40  ;;  %v2917_v40 = vld [vmem:[%s4977_s5 + $0x20] sm:$0xff] }
  0xf7   :  { %v3353_v41 = vpop.f32.mrf.mxu0 }
  0xf8   :  { %v4132_v50 = vmax.f32 %v232_v44, 0.0  ;;  %v2922_v41 = vld [vmem:[%s4976_s4 + $0x48] sm:$0xff]  ;;  %v2930_v44 = vld [vmem:[%s4977_s5 + $0x38] sm:$0xff] }
  0xf9   :  { %v236_v43 = vpop.f32.mrf.mxu0 }
  0xfa   :  { %v237_v45 = vadd.f32 %v2876_v42, %v236_v43  ;;  %v2923_v42 = vld [vmem:[%s4976_s4 + $0x50] sm:$0xff]  ;;  %v2924_v43 = vld [vmem:[%s4976_s4 + $0x58] sm:$0x3] }
  0xfb   :  { %v3356_v46 = vpop.f32.mrf.mxu0 }
  0xfc   :  { %v4130_v48 = vmax.f32 %v237_v45, 0.0  ;;  %v2929_v45 = vld [vmem:[%s4977_s5 + $0x30] sm:$0xff] }
  0xfe   :  { %3358 = vmatpush3.msk.msra.mxu1 %vm266_vm3, %v4130_v48  ;;  %3454 = vmatpush3.msk.msra.mxu0 %vm266_vm3, %v4130_v48 }
  0xff   :  { %3359 = vmatprep.subr.mxu1 %v3953_v1  ;;  %3455 = vmatprep.subr.mxu0 %v3953_v1 }
 0x100   :  { %3360 = vmatpush3.msra.mxu1 %v4132_v50  ;;  %3456 = vmatpush3.msra.mxu0 %v4132_v50 }
 0x101   :  { %3361 = vmatprep.subr.mxu1 %v3953_v1  ;;  %3457 = vmatprep.subr.mxu0 %v3953_v1 }
 0x102   :  { %3362 = vmatpush3.msra.mxu1 %v4140_v52  ;;  %3458 = vmatpush3.msra.mxu0 %v4140_v52 }
 0x103   :  { %3363 = vmatprep.subr.mxu1 %v3953_v1  ;;  %3459 = vmatprep.subr.mxu0 %v3953_v1 }
 0x104   :  { %3364 = vmatpush3.msra.mxu1 %v4146_v54  ;;  %3460 = vmatpush3.msra.mxu0 %v4146_v54 }
 0x105   :  { %3365 = vmatprep.subr.mxu1 %v3953_v1  ;;  %3461 = vmatprep.subr.mxu0 %v3953_v1 }
 0x106   :  { %3366 = vmatpush3.msra.mxu1 %v4152_v56  ;;  %3462 = vmatpush3.msra.mxu0 %v4152_v56 }
 0x107   :  { %3367 = vmatprep.subr.mxu1 %v3953_v1  ;;  %3463 = vmatprep.subr.mxu0 %v3953_v1 }
 0x108   :  { %3368 = vmatpush3.msra.mxu1 %v4158_v58  ;;  %3464 = vmatpush3.msra.mxu0 %v4158_v58 }
 0x109   :  { %3369 = vmatprep.subr.mxu1 %v3953_v1  ;;  %3465 = vmatprep.subr.mxu0 %v3953_v1 }
 0x10a   :  { %3370 = vmatpush3.msra.mxu1 %v4164_v60  ;;  %3466 = vmatpush3.msra.mxu0 %v4164_v60 }
 0x10b   :  { %3371 = vmatprep.subr.mxu1 %v3953_v1  ;;  %3467 = vmatprep.subr.mxu0 %v3953_v1 }
 0x10c   :  { %3372 = vmatpush3.msra.mxu1 %v4170_v62  ;;  %3468 = vmatpush3.msra.mxu0 %v4170_v62 }
 0x10d   :  { %3373 = vmatprep.subr.mxu1 %v3953_v1  ;;  %3469 = vmatprep.subr.mxu0 %v3953_v1 }
 0x10e   :  { %3374 = vmatpush3.msra.mxu1 %v4177_v0  ;;  %3470 = vmatpush3.msra.mxu0 %v4177_v0 }
 0x10f   :  { %3375 = vmatprep.subr.mxu1 %v3953_v1  ;;  %3471 = vmatprep.subr.mxu0 %v3953_v1 }
 0x110   :  { %3376 = vmatpush3.msra.mxu1 %v4184_v3  ;;  %3472 = vmatpush3.msra.mxu0 %v4184_v3 }
 0x111   :  { %3377 = vmatprep.subr.mxu1 %v3953_v1  ;;  %3473 = vmatprep.subr.mxu0 %v3953_v1 }
 0x112   :  { %3378 = vmatpush3.msra.mxu1 %v4191_v5  ;;  %3474 = vmatpush3.msra.mxu0 %v4191_v5 }
 0x113   :  { %3379 = vmatprep.subr.mxu1 %v3953_v1  ;;  %3475 = vmatprep.subr.mxu0 %v3953_v1 }
 0x114   :  { %3380 = vmatpush3.msra.mxu1 %v4197_v6  ;;  %3476 = vmatpush3.msra.mxu0 %v4197_v6 }
 0x115   :  { %3381 = vmatprep.subr.mxu1 %v3953_v1  ;;  %3477 = vmatprep.subr.mxu0 %v3953_v1 }
 0x116   :  { %3382 = vmatpush3.msra.mxu1 %v4203_v7  ;;  %3478 = vmatpush3.msra.mxu0 %v4203_v7 }
 0x117   :  { %3384 = vmatmul.mubr.msk.f32.vlgmr.msra.gmra.mxu1 %vm256_vm4, %v253_v8  ;;  %3392 = vmatprep.subr.mxu1 %v3953_v1 }
 0x118   :  { %3393 = vmatpush3.msk.msra.mxu1 %vm266_vm3, %v4130_v48  ;;  %3386 = vmatprep.mubr.msk.f32.mxu1 %vm3954_vm1, %v3953_v1 }
 0x119   :  { %3394 = vmatprep.subr.mxu1 %v3953_v1  ;;  %3480 = vmatmul.mubr.msk.f32.vlgmr.msra.gmra.mxu0 %vm256_vm4, %v2910_v9 }
 0x11a   :  { %3395 = vmatpush3.msra.mxu1 %v4132_v50  ;;  %3482 = vmatprep.mubr.msk.f32.mxu0 %vm3954_vm1, %v3953_v1 }
 0x11b   :  { %3396 = vmatprep.subr.mxu1 %v3953_v1  ;;  %3387 = vmatmul.mubr.msk.f32.gmra.mxu1 %vm256_vm4, %v254_v10 }
 0x11c   :  { %3397 = vmatpush3.msra.mxu1 %v4140_v52  ;;  %3389 = vmatprep.mubr.msk.f32.mxu1 %vm3954_vm1, %v3953_v1 }
 0x11d   :  { %3398 = vmatprep.subr.mxu1 %v3953_v1  ;;  %3483 = vmatmul.mubr.msk.f32.gmra.mxu0 %vm256_vm4, %v2911_v11 }
 0x11e   :  { %3399 = vmatpush3.msra.mxu1 %v4146_v54  ;;  %3485 = vmatprep.mubr.msk.f32.mxu0 %vm3954_vm1, %v3953_v1 }
 0x11f   :  { %3400 = vmatprep.subr.mxu1 %v3953_v1  ;;  %3390 = vmatmul.mubr.msk.f32.gmra.mxu1 %vm256_vm4, %v255_v12 }
 0x120   :  { %3401 = vmatpush3.msra.mxu1 %v4152_v56  ;;  %3418 = vmatprep.mubr.msk.f32.mxu1 %vm3954_vm1, %v3953_v1 }
 0x121   :  { %3402 = vmatprep.subr.mxu1 %v3953_v1  ;;  %3486 = vmatmul.mubr.msk.f32.gmra.mxu0 %vm256_vm4, %v2912_v13 }
 0x122   :  { %3403 = vmatpush3.msra.mxu1 %v4158_v58  ;;  %3536 = vmatprep.subr.mxu0 %v3953_v1 }
 0x123   :  { %3404 = vmatprep.subr.mxu1 %v3953_v1  ;;  %3540 = vmatprep.mubr.msk.f32.mxu0 %vm3954_vm1, %v3953_v1 }
 0x124   :  { %3405 = vmatpush3.msra.mxu1 %v4164_v60  ;;  %3537 = vmatpush3.msra.mxu0 %v2930_v44 }
 0x125   :  { %3406 = vmatprep.subr.mxu1 %v3953_v1  ;;  %3538 = vmatprep.subr.mxu0 %v3953_v1 }
 0x126   :  { %3407 = vmatpush3.msra.mxu1 %v4170_v62  ;;  %3539 = vmatpush3.msra.mxu0 %v2929_v45 }
 0x127   :  { %3408 = vmatprep.subr.mxu1 %v3953_v1  ;;  %3549 = vmatprep.subr.mxu0 %v3953_v1 }
 0x128   :  { %3409 = vmatpush3.msra.mxu1 %v4177_v0 }
 0x129   :  { %3410 = vmatprep.subr.mxu1 %v3953_v1 }
 0x12a   :  { %3411 = vmatpush3.msra.mxu1 %v4184_v3 }
 0x12b   :  { %3412 = vmatprep.subr.mxu1 %v3953_v1 }
 0x12c   :  { %3413 = vmatpush3.msra.mxu1 %v4191_v5 }
 0x12d   :  { %3414 = vmatprep.subr.mxu1 %v3953_v1 }
 0x12e   :  { %3415 = vmatpush3.msra.mxu1 %v4197_v6 }
 0x12f   :  { %3416 = vmatprep.subr.mxu1 %v3953_v1 }
 0x130   :  { %3417 = vmatpush3.msra.mxu1 %v4203_v7 }
 0x131   :  { %3419 = vmatmul.mubr.msk.f32.vlgmr.msra.gmra.mxu1 %vm256_vm4, %v2895_v14  ;;  %3427 = vmatprep.subr.mxu1 %v3953_v1 }
 0x132   :  { %3421 = vmatprep.mubr.msk.f32.mxu1 %vm3954_vm1, %v3953_v1  ;;  %3428 = vmatpush3.msra.mxu1 %v2903_v17 }
 0x133   :  { %3429 = vmatprep.subr.mxu1 %v3953_v1 }
 0x134   :  { %3430 = vmatpush3.msra.mxu1 %v2902_v18 }
 0x135   :  { %3422 = vmatmul.mubr.msk.f32.gmra.mxu1 %vm256_vm4, %v2896_v15  ;;  %3440 = vmatprep.subr.mxu1 %v3953_v1 }
 0x136   :  { %3424 = vmatprep.mubr.msk.f32.mxu1 %vm3954_vm1, %v3953_v1 }
 0x139   :  { %3425 = vmatmul.mubr.msk.f32.gmra.mxu1 %vm256_vm4, %v2897_v16 }
 0x13a   :  { %3431 = vmatprep.mubr.msk.f32.mxu1 %vm3954_vm1, %v3953_v1 }
 0x1d7   :  { %v336_v19 = vpop.f32.mrf.mxu1 }
 0x1d9   :  { %v3385_v20 = vpop.f32.mrf.mxu1  ;;  %v706_v21 = vpop.f32.mrf.mxu0 }
 0x1db   :  { %v341_v22 = vpop.f32.mrf.mxu1  ;;  %v3481_v23 = vpop.f32.mrf.mxu0 }
 0x1dd   :  { %v3388_v24 = vpop.f32.mrf.mxu1  ;;  %v711_v25 = vpop.f32.mrf.mxu0 }
 0x1df   :  { %v346_v26 = vpop.f32.mrf.mxu1  ;;  %v3484_v27 = vpop.f32.mrf.mxu0 }
 0x1e0   :  { %v2935_v27 = vld [vmem:[%s4976_s4 + $0x68] sm:$0xff] }
 0x1e1   :  { %v3391_v28 = vpop.f32.mrf.mxu1  ;;  %v716_v29 = vpop.f32.mrf.mxu0 }
 0x1e2   :  { %v2936_v28 = vld [vmem:[%s4976_s4 + $0x70] sm:$0x3] }
 0x1e3   :  { %v3487_v30 = vpop.f32.mrf.mxu0 }
 0x1e4   :  { %v2941_v30 = vld [vmem:[%s4977_s5 + $0x40] sm:$0xff] }
 0x1f1   :  { %v431_v32 = vpop.f32.mrf.mxu1 }
 0x1f2   :  { %3432 = vmatmul.mubr.msk.f32.vlgmr.msra.gmra.mxu1 %vm448_vm5, %v431_v32 }
 0x1f3   :  { %3441 = vmatpush3.msra.mxu1 %v351_v31  ;;  %v3420_v34 = vpop.f32.mrf.mxu1  ;;  %3434 = vmatprep.mubr.msk.f32.mxu1 %vm3954_vm1, %v3953_v1 }
 0x1f4   :  { %3442 = vmatprep.subr.mxu1 %v3953_v1 }
 0x1f5   :  { %v436_v35 = vpop.f32.mrf.mxu1  ;;  %3443 = vmatpush3.msra.mxu1 %v350_v33 }
 0x1f6   :  { %3435 = vmatmul.mubr.msk.f32.gmra.mxu1 %vm448_vm5, %v436_v35  ;;  %3488 = vmatprep.subr.mxu1 %v3953_v1 }
 0x1f7   :  { %v3423_v36 = vpop.f32.mrf.mxu1  ;;  %3437 = vmatprep.mubr.msk.f32.mxu1 %vm3954_vm1, %v3953_v1 }
 0x1f9   :  { %v441_v37 = vpop.f32.mrf.mxu1 }
 0x1fa   :  { %3438 = vmatmul.mubr.msk.f32.gmra.mxu1 %vm448_vm5, %v441_v37 }
 0x1fb   :  { %v3426_v38 = vpop.f32.mrf.mxu1  ;;  %3444 = vmatprep.mubr.msk.f32.mxu1 %vm3954_vm1, %v3953_v1 }
 0x1fe   :  { %3445 = vmatmul.mubr.msk.f32.vlgmr.msra.gmra.mxu1 %vm448_vm5, %v336_v19 }
 0x1ff   :  { %3489 = vmatpush3.msra.mxu1 %v2918_v39  ;;  %3447 = vmatprep.mubr.msk.f32.mxu1 %vm3954_vm1, %v3953_v1 }
 0x200   :  { %3490 = vmatprep.subr.mxu1 %v3953_v1 }
 0x201   :  { %3491 = vmatpush3.msra.mxu1 %v2917_v40 }
 0x202   :  { %3448 = vmatmul.mubr.msk.f32.gmra.mxu1 %vm448_vm5, %v341_v22  ;;  %3501 = vmatprep.subr.mxu1 %v3953_v1 }
 0x203   :  { %3450 = vmatprep.mubr.msk.f32.mxu1 %vm3954_vm1, %v3953_v1 }
 0x206   :  { %3451 = vmatmul.mubr.msk.f32.gmra.mxu1 %vm448_vm5, %v346_v26  ;;  %v2934_v26 = vld [vmem:[%s4976_s4 + $0x60] sm:$0xff] }
 0x207   :  { %3492 = vmatprep.mubr.msk.f32.mxu1 %vm3954_vm1, %v3953_v1 }
 0x20a   :  { %3493 = vmatmul.mubr.msk.f32.vlgmr.msra.gmra.mxu1 %vm448_vm5, %v706_v21 }
 0x20b   :  { %3502 = vmatpush3.msk.msra.mxu1 %vm266_vm3, %v4130_v48  ;;  %3495 = vmatprep.mubr.msk.f32.mxu1 %vm3954_vm1, %v3953_v1 }
 0x20c   :  { %3503 = vmatprep.subr.mxu1 %v3953_v1 }
 0x20d   :  { %3504 = vmatpush3.msra.mxu1 %v4132_v50 }
 0x20e   :  { %3505 = vmatprep.subr.mxu1 %v3953_v1  ;;  %3496 = vmatmul.mubr.msk.f32.gmra.mxu1 %vm448_vm5, %v711_v25 }
 0x20f   :  { %3506 = vmatpush3.msra.mxu1 %v4140_v52  ;;  %3498 = vmatprep.mubr.msk.f32.mxu1 %vm3954_vm1, %v3953_v1 }
 0x210   :  { %3507 = vmatprep.subr.mxu1 %v3953_v1 }
 0x211   :  { %3508 = vmatpush3.msra.mxu1 %v4146_v54 }
 0x212   :  { %3509 = vmatprep.subr.mxu1 %v3953_v1  ;;  %3499 = vmatmul.mubr.msk.f32.gmra.mxu1 %vm448_vm5, %v716_v29  ;;  %v2942_v29 = vld [vmem:[%s4977_s5 + $0x48] sm:$0xff] }
 0x213   :  { %3510 = vmatpush3.msra.mxu1 %v4152_v56  ;;  %3527 = vmatprep.mubr.msk.f32.mxu1 %vm3954_vm1, %v3953_v1 }
 0x214   :  { %3511 = vmatprep.subr.mxu1 %v3953_v1 }
 0x215   :  { %3512 = vmatpush3.msra.mxu1 %v4158_v58 }
 0x216   :  { %3513 = vmatprep.subr.mxu1 %v3953_v1 }
 0x217   :  { %3514 = vmatpush3.msra.mxu1 %v4164_v60 }
 0x218   :  { %3515 = vmatprep.subr.mxu1 %v3953_v1 }
 0x219   :  { %3516 = vmatpush3.msra.mxu1 %v4170_v62 }
 0x21a   :  { %3517 = vmatprep.subr.mxu1 %v3953_v1 }
 0x21b   :  { %3518 = vmatpush3.msra.mxu1 %v4177_v0 }
 0x21c   :  { %3519 = vmatprep.subr.mxu1 %v3953_v1 }
 0x21d   :  { %3520 = vmatpush3.msra.mxu1 %v4184_v3 }
 0x21e   :  { %3521 = vmatprep.subr.mxu1 %v3953_v1 }
 0x21f   :  { %3522 = vmatpush3.msra.mxu1 %v4191_v5 }
 0x220   :  { %3523 = vmatprep.subr.mxu1 %v3953_v1 }
 0x221   :  { %3524 = vmatpush3.msra.mxu1 %v4197_v6 }
 0x222   :  { %3525 = vmatprep.subr.mxu1 %v3953_v1 }
 0x223   :  { %3526 = vmatpush3.msra.mxu1 %v4203_v7 }
 0x224   :  { %3528 = vmatmul.mubr.msk.f32.vlgmr.msra.gmra.mxu1 %vm256_vm4, %v2922_v41  ;;  %3584 = vmatprep.subr.mxu1 %v3953_v1 }
 0x225   :  { %3530 = vmatprep.mubr.msk.f32.mxu1 %vm3954_vm1, %v3953_v1  ;;  %3585 = vmatpush3.msra.mxu1 %v2942_v29 }
 0x226   :  { %3586 = vmatprep.subr.mxu1 %v3953_v1 }
 0x227   :  { %3587 = vmatpush3.msra.mxu1 %v2941_v30 }
 0x228   :  { %3531 = vmatmul.mubr.msk.f32.gmra.mxu1 %vm256_vm4, %v2923_v42  ;;  %3597 = vmatprep.subr.mxu1 %v3953_v1 }
 0x229   :  { %3533 = vmatprep.mubr.msk.f32.mxu1 %vm3954_vm1, %v3953_v1 }
 0x22c   :  { %3534 = vmatmul.mubr.msk.f32.gmra.mxu1 %vm256_vm4, %v2924_v43 }
 0x22d   :  { %3588 = vmatprep.mubr.msk.f32.mxu1 %vm3954_vm1, %v3953_v1 }
 0x2b2   :  { %v524_v46 = vpop.f32.mrf.mxu1 }
 0x2b4   :  { %v3433_v47 = vpop.f32.mrf.mxu1 }
 0x2b5   :  { %v2947_v47 = vld [vmem:[%s4976_s4 + $0x80] sm:$0xff] }
 0x2b6   :  { %v529_v49 = vpop.f32.mrf.mxu1 }
 0x2b8   :  { %v3436_v51 = vpop.f32.mrf.mxu1 }
 0x2b9   :  { %v2954_v51 = vld [vmem:[%s4977_s5 + $0x58] sm:$0xff] }
 0x2ba   :  { %v534_v53 = vpop.f32.mrf.mxu1 }
 0x2bc   :  { %v3439_v55 = vpop.f32.mrf.mxu1 }
 0x2be   :  { %v613_v57 = vpop.f32.mrf.mxu1 }
 0x2bf   :  { %v614_v59 = vadd.f32 %v613_v57, %v524_v46  ;;  %v2946_v46 = vld [vmem:[%s4976_s4 + $0x78] sm:$0xff] }
 0x2c0   :  { %v3446_v61 = vpop.f32.mrf.mxu1 }
 0x2c2   :  { %v618_v63 = vpop.f32.mrf.mxu1 }
 0x2c3   :  { %v619_v2 = vadd.f32 %v618_v63, %v529_v49  ;;  %v2948_v49 = vld [vmem:[%s4976_s4 + $0x88] sm:$0x3] }
 0x2c4   :  { %v3449_v4 = vpop.f32.mrf.mxu1 }
 0x2c6   :  { %v623_v8 = vpop.f32.mrf.mxu1 }
 0x2c7   :  { %v624_v9 = vadd.f32 %v623_v8, %v534_v53  ;;  %v2953_v53 = vld [vmem:[%s4977_s5 + $0x50] sm:$0xff] }
 0x2c8   :  { %v3452_v10 = vpop.f32.mrf.mxu1 }
 0x2ca   :  { %v798_v11 = vpop.f32.mrf.mxu1 }
 0x2cb   :  { %v812_v12 = vadd.f32 %v798_v11, %v614_v59 }
 0x2cc   :  { %v3494_v13 = vpop.f32.mrf.mxu1 }
 0x2ce   :  { %v803_v14 = vpop.f32.mrf.mxu1 }
 0x2cf   :  { %v813_v15 = vadd.f32 %v803_v14, %v619_v2 }
 0x2d0   :  { %v3497_v16 = vpop.f32.mrf.mxu1 }
 0x2d1   :  { %v2958_v16 = vld [vmem:[%s4976_s4 + $0x90] sm:$0xff] }
 0x2d2   :  { %v808_v17 = vpop.f32.mrf.mxu1 }
 0x2d3   :  { %v814_v18 = vadd.f32 %v808_v17, %v624_v9  ;;  %v2959_v17 = vld [vmem:[%s4976_s4 + $0x98] sm:$0xff] }
 0x2d4   :  { %v3500_v19 = vpop.f32.mrf.mxu1 }
 0x2d5   :  { %v2966_v19 = vld [vmem:[%s4977_s5 + $0x68] sm:$0xff] }
 0x2e4   :  { %v894_v20 = vpop.f32.mrf.mxu1 }
 0x2e5   :  { %3541 = vmatmul.mubr.msk.f32.vlgmr.msra.gmra.mxu0 %vm448_vm5, %v894_v20  ;;  %v2965_v20 = vld [vmem:[%s4977_s5 + $0x60] sm:$0xff] }
 0x2e6   :  { %3550 = vmatpush3.msk.msra.mxu0 %vm266_vm3, %v4130_v48  ;;  %v3529_v21 = vpop.f32.mrf.mxu1  ;;  %3543 = vmatprep.mubr.msk.f32.mxu0 %vm3954_vm1, %v3953_v1 }
 0x2e7   :  { %3551 = vmatprep.subr.mxu0 %v3953_v1 }
 0x2e8   :  { %3552 = vmatpush3.msra.mxu0 %v4132_v50  ;;  %v899_v22 = vpop.f32.mrf.mxu1 }
 0x2e9   :  { %3553 = vmatprep.subr.mxu0 %v3953_v1  ;;  %3544 = vmatmul.mubr.msk.f32.gmra.mxu0 %vm448_vm5, %v899_v22 }
 0x2ea   :  { %3554 = vmatpush3.msra.mxu0 %v4140_v52  ;;  %v3532_v23 = vpop.f32.mrf.mxu1  ;;  %3546 = vmatprep.mubr.msk.f32.mxu0 %vm3954_vm1, %v3953_v1 }
 0x2eb   :  { %3555 = vmatprep.subr.mxu0 %v3953_v1 }
 0x2ec   :  { %3556 = vmatpush3.msra.mxu0 %v4146_v54  ;;  %v904_v24 = vpop.f32.mrf.mxu1 }
 0x2ed   :  { %3557 = vmatprep.subr.mxu0 %v3953_v1  ;;  %3547 = vmatmul.mubr.msk.f32.gmra.mxu0 %vm448_vm5, %v904_v24 }
 0x2ee   :  { %3558 = vmatpush3.msra.mxu0 %v4152_v56  ;;  %v3535_v25 = vpop.f32.mrf.mxu1  ;;  %3575 = vmatprep.mubr.msk.f32.mxu0 %vm3954_vm1, %v3953_v1 }
 0x2ef   :  { %3559 = vmatprep.subr.mxu0 %v3953_v1 }
 0x2f0   :  { %3560 = vmatpush3.msra.mxu0 %v4158_v58 }
 0x2f1   :  { %3561 = vmatprep.subr.mxu0 %v3953_v1 }
 0x2f2   :  { %3562 = vmatpush3.msra.mxu0 %v4164_v60 }
 0x2f3   :  { %3563 = vmatprep.subr.mxu0 %v3953_v1 }
 0x2f4   :  { %3564 = vmatpush3.msra.mxu0 %v4170_v62 }
 0x2f5   :  { %3565 = vmatprep.subr.mxu0 %v3953_v1 }
 0x2f6   :  { %3566 = vmatpush3.msra.mxu0 %v4177_v0 }
 0x2f7   :  { %3567 = vmatprep.subr.mxu0 %v3953_v1 }
 0x2f8   :  { %3568 = vmatpush3.msra.mxu0 %v4184_v3 }
 0x2f9   :  { %3569 = vmatprep.subr.mxu0 %v3953_v1 }
 0x2fa   :  { %3570 = vmatpush3.msra.mxu0 %v4191_v5 }
 0x2fb   :  { %3571 = vmatprep.subr.mxu0 %v3953_v1 }
 0x2fc   :  { %3572 = vmatpush3.msra.mxu0 %v4197_v6 }
 0x2fd   :  { %3573 = vmatprep.subr.mxu0 %v3953_v1 }
 0x2fe   :  { %3574 = vmatpush3.msra.mxu0 %v4203_v7 }
 0x2ff   :  { %3576 = vmatmul.mubr.msk.f32.vlgmr.msra.gmra.mxu0 %vm256_vm4, %v2934_v26  ;;  %3632 = vmatprep.subr.mxu0 %v3953_v1 }
 0x300   :  { %3578 = vmatprep.mubr.msk.f32.mxu0 %vm3954_vm1, %v3953_v1  ;;  %3633 = vmatpush3.msra.mxu0 %v2954_v51 }
 0x301   :  { %3634 = vmatprep.subr.mxu0 %v3953_v1 }
 0x302   :  { %3635 = vmatpush3.msra.mxu0 %v2953_v53 }
 0x303   :  { %3579 = vmatmul.mubr.msk.f32.gmra.mxu0 %vm256_vm4, %v2935_v27  ;;  %3645 = vmatprep.subr.mxu0 %v3953_v1 }
 0x304   :  { %3581 = vmatprep.mubr.msk.f32.mxu0 %vm3954_vm1, %v3953_v1 }
 0x307   :  { %3582 = vmatmul.mubr.msk.f32.gmra.mxu0 %vm256_vm4, %v2936_v28 }
 0x308   :  { %3636 = vmatprep.mubr.msk.f32.mxu0 %vm3954_vm1, %v3953_v1 }
 0x3a5   :  { %v986_v31 = vpop.f32.mrf.mxu0 }
 0x3a6   :  { %v1000_v32 = vadd.f32 %v986_v31, %v812_v12 }
 0x3a7   :  { %v3542_v33 = vpop.f32.mrf.mxu0 }
 0x3a9   :  { %v991_v34 = vpop.f32.mrf.mxu0 }
 0x3aa   :  { %v1001_v35 = vadd.f32 %v991_v34, %v813_v15 }
 0x3ab   :  { %v3545_v36 = vpop.f32.mrf.mxu0 }
 0x3ac   :  { %v2970_v36 = vld [vmem:[%s4976_s4 + $0xa8] sm:$0xff] }
 0x3ad   :  { %v996_v37 = vpop.f32.mrf.mxu0 }
 0x3ae   :  { %v1002_v38 = vadd.f32 %v996_v37, %v814_v18  ;;  %v2960_v18 = vld [vmem:[%s4976_s4 + $0xa0] sm:$0x3]  ;;  %v2971_v37 = vld [vmem:[%s4976_s4 + $0xb0] sm:$0xff] }
 0x3af   :  { %v3548_v39 = vpop.f32.mrf.mxu0 }
 0x3b0   :  { %v2978_v39 = vld [vmem:[%s4977_s5 + $0x78] sm:$0xff] }
 0x3bf   :  { %v1082_v40 = vpop.f32.mrf.mxu0 }
 0x3c0   :  { %3589 = vmatmul.mubr.msk.f32.vlgmr.msra.gmra.mxu1 %vm448_vm5, %v1082_v40  ;;  %v2977_v40 = vld [vmem:[%s4977_s5 + $0x70] sm:$0xff] }
 0x3c1   :  { %3598 = vmatpush3.msk.msra.mxu1 %vm266_vm3, %v4130_v48  ;;  %v3577_v41 = vpop.f32.mrf.mxu0  ;;  %3591 = vmatprep.mubr.msk.f32.mxu1 %vm3954_vm1, %v3953_v1 }
 0x3c2   :  { %3599 = vmatprep.subr.mxu1 %v3953_v1 }
 0x3c3   :  { %3600 = vmatpush3.msra.mxu1 %v4132_v50  ;;  %v1087_v42 = vpop.f32.mrf.mxu0 }
 0x3c4   :  { %3601 = vmatprep.subr.mxu1 %v3953_v1  ;;  %3592 = vmatmul.mubr.msk.f32.gmra.mxu1 %vm448_vm5, %v1087_v42 }
 0x3c5   :  { %3602 = vmatpush3.msra.mxu1 %v4140_v52  ;;  %v3580_v43 = vpop.f32.mrf.mxu0  ;;  %3594 = vmatprep.mubr.msk.f32.mxu1 %vm3954_vm1, %v3953_v1 }
 0x3c6   :  { %3603 = vmatprep.subr.mxu1 %v3953_v1 }
 0x3c7   :  { %3604 = vmatpush3.msra.mxu1 %v4146_v54  ;;  %v1092_v44 = vpop.f32.mrf.mxu0 }
 0x3c8   :  { %3605 = vmatprep.subr.mxu1 %v3953_v1  ;;  %3595 = vmatmul.mubr.msk.f32.gmra.mxu1 %vm448_vm5, %v1092_v44 }
 0x3c9   :  { %3606 = vmatpush3.msra.mxu1 %v4152_v56  ;;  %v3583_v45 = vpop.f32.mrf.mxu0  ;;  %3623 = vmatprep.mubr.msk.f32.mxu1 %vm3954_vm1, %v3953_v1 }
 0x3ca   :  { %3607 = vmatprep.subr.mxu1 %v3953_v1 }
 0x3cb   :  { %3608 = vmatpush3.msra.mxu1 %v4158_v58 }
 0x3cc   :  { %3609 = vmatprep.subr.mxu1 %v3953_v1 }
 0x3cd   :  { %3610 = vmatpush3.msra.mxu1 %v4164_v60 }
 0x3ce   :  { %3611 = vmatprep.subr.mxu1 %v3953_v1 }
 0x3cf   :  { %3612 = vmatpush3.msra.mxu1 %v4170_v62 }
 0x3d0   :  { %3613 = vmatprep.subr.mxu1 %v3953_v1 }
 0x3d1   :  { %3614 = vmatpush3.msra.mxu1 %v4177_v0 }
 0x3d2   :  { %3615 = vmatprep.subr.mxu1 %v3953_v1 }
 0x3d3   :  { %3616 = vmatpush3.msra.mxu1 %v4184_v3 }
 0x3d4   :  { %3617 = vmatprep.subr.mxu1 %v3953_v1 }
 0x3d5   :  { %3618 = vmatpush3.msra.mxu1 %v4191_v5 }
 0x3d6   :  { %3619 = vmatprep.subr.mxu1 %v3953_v1 }
 0x3d7   :  { %3620 = vmatpush3.msra.mxu1 %v4197_v6 }
 0x3d8   :  { %3621 = vmatprep.subr.mxu1 %v3953_v1 }
 0x3d9   :  { %3622 = vmatpush3.msra.mxu1 %v4203_v7 }
 0x3da   :  { %3624 = vmatmul.mubr.msk.f32.vlgmr.msra.gmra.mxu1 %vm256_vm4, %v2946_v46  ;;  %3680 = vmatprep.subr.mxu1 %v3953_v1 }
 0x3db   :  { %3626 = vmatprep.mubr.msk.f32.mxu1 %vm3954_vm1, %v3953_v1  ;;  %3681 = vmatpush3.msra.mxu1 %v2966_v19  ;;  %v2998_v19 = vld [vmem:[%s4979_s7 + $0x20] sm:$0xff] }
 0x3dc   :  { %3682 = vmatprep.subr.mxu1 %v3953_v1 }
 0x3dd   :  { %3683 = vmatpush3.msra.mxu1 %v2965_v20  ;;  %v1964_v20 = vld [vmem:[%s4979_s7] sm:$0xff] }
 0x3de   :  { %3627 = vmatmul.mubr.msk.f32.gmra.mxu1 %vm256_vm4, %v2947_v47  ;;  %3693 = vmatprep.subr.mxu1 %v3953_v1 }
 0x3df   :  { %3629 = vmatprep.mubr.msk.f32.mxu1 %vm3954_vm1, %v3953_v1 }
 0x3e2   :  { %3630 = vmatmul.mubr.msk.f32.gmra.mxu1 %vm256_vm4, %v2948_v49 }
 0x3e3   :  { %3684 = vmatprep.mubr.msk.f32.mxu1 %vm3954_vm1, %v3953_v1 }
 0x480   :  { %v1174_v55 = vpop.f32.mrf.mxu1 }
 0x481   :  { %v1188_v57 = vadd.f32 %v1174_v55, %v1000_v32 }
 0x482   :  { %v3590_v59 = vpop.f32.mrf.mxu1 }
 0x484   :  { %v1179_v61 = vpop.f32.mrf.mxu1 }
 0x485   :  { %v1189_v63 = vadd.f32 %v1179_v61, %v1001_v35 }
 0x486   :  { %v3593_v2 = vpop.f32.mrf.mxu1 }
 0x488   :  { %v1184_v4 = vpop.f32.mrf.mxu1 }
 0x489   :  { %v1190_v8 = vadd.f32 %v1184_v4, %v1002_v38  ;;  %v2972_v38 = vld [vmem:[%s4976_s4 + $0xb8] sm:$0x3] }
 0x48a   :  { %v3596_v9 = vpop.f32.mrf.mxu1 }
 0x49a   :  { %v1270_v10 = vpop.f32.mrf.mxu1 }
 0x49b   :  { %3637 = vmatmul.mubr.msk.f32.vlgmr.msra.gmra.mxu0 %vm448_vm5, %v1270_v10 }
 0x49c   :  { %3646 = vmatpush3.msk.msra.mxu0 %vm266_vm3, %v4130_v48  ;;  %v3625_v11 = vpop.f32.mrf.mxu1  ;;  %3639 = vmatprep.mubr.msk.f32.mxu0 %vm3954_vm1, %v3953_v1 }
 0x49d   :  { %3647 = vmatprep.subr.mxu0 %v3953_v1 }
 0x49e   :  { %3648 = vmatpush3.msra.mxu0 %v4132_v50  ;;  %v1275_v12 = vpop.f32.mrf.mxu1 }
 0x49f   :  { %3649 = vmatprep.subr.mxu0 %v3953_v1  ;;  %3640 = vmatmul.mubr.msk.f32.gmra.mxu0 %vm448_vm5, %v1275_v12 }
 0x4a0   :  { %3650 = vmatpush3.msra.mxu0 %v4140_v52  ;;  %v3628_v13 = vpop.f32.mrf.mxu1  ;;  %3642 = vmatprep.mubr.msk.f32.mxu0 %vm3954_vm1, %v3953_v1 }
 0x4a1   :  { %3651 = vmatprep.subr.mxu0 %v3953_v1  ;;  %v3001_v13 = vld [vmem:[%s4979_s7 + $0x38] sm:$0xff] }
 0x4a2   :  { %3652 = vmatpush3.msra.mxu0 %v4146_v54  ;;  %v1280_v14 = vpop.f32.mrf.mxu1 }
 0x4a3   :  { %3653 = vmatprep.subr.mxu0 %v3953_v1  ;;  %3643 = vmatmul.mubr.msk.f32.gmra.mxu0 %vm448_vm5, %v1280_v14  ;;  %v1967_v14 = vld [vmem:[%s4979_s7 + $0x18] sm:$0xff] }
 0x4a4   :  { %3654 = vmatpush3.msra.mxu0 %v4152_v56  ;;  %v3631_v15 = vpop.f32.mrf.mxu1  ;;  %3671 = vmatprep.mubr.msk.f32.mxu0 %vm3954_vm1, %v3953_v1 }
 0x4a5   :  { %3655 = vmatprep.subr.mxu0 %v3953_v1  ;;  %v3000_v15 = vld [vmem:[%s4979_s7 + $0x30] sm:$0xff] }
 0x4a6   :  { %3656 = vmatpush3.msra.mxu0 %v4158_v58 }
 0x4a7   :  { %3657 = vmatprep.subr.mxu0 %v3953_v1 }
 0x4a8   :  { %3658 = vmatpush3.msra.mxu0 %v4164_v60 }
 0x4a9   :  { %3659 = vmatprep.subr.mxu0 %v3953_v1 }
 0x4aa   :  { %3660 = vmatpush3.msra.mxu0 %v4170_v62 }
 0x4ab   :  { %3661 = vmatprep.subr.mxu0 %v3953_v1 }
 0x4ac   :  { %3662 = vmatpush3.msra.mxu0 %v4177_v0 }
 0x4ad   :  { %3663 = vmatprep.subr.mxu0 %v3953_v1 }
 0x4ae   :  { %3664 = vmatpush3.msra.mxu0 %v4184_v3 }
 0x4af   :  { %3665 = vmatprep.subr.mxu0 %v3953_v1 }
 0x4b0   :  { %3666 = vmatpush3.msra.mxu0 %v4191_v5 }
 0x4b1   :  { %3667 = vmatprep.subr.mxu0 %v3953_v1 }
 0x4b2   :  { %3668 = vmatpush3.msra.mxu0 %v4197_v6 }
 0x4b3   :  { %3669 = vmatprep.subr.mxu0 %v3953_v1 }
 0x4b4   :  { %3670 = vmatpush3.msra.mxu0 %v4203_v7 }
 0x4b5   :  { %3672 = vmatmul.mubr.msk.f32.vlgmr.msra.gmra.mxu0 %vm256_vm4, %v2958_v16  ;;  %3728 = vmatprep.subr.mxu0 %v3953_v1  ;;  %v1966_v16 = vld [vmem:[%s4979_s7 + $0x10] sm:$0xff] }
 0x4b6   :  { %3674 = vmatprep.mubr.msk.f32.mxu0 %vm3954_vm1, %v3953_v1  ;;  %3729 = vmatpush3.msra.mxu0 %v2978_v39 }
 0x4b7   :  { %3730 = vmatprep.subr.mxu0 %v3953_v1 }
 0x4b8   :  { %3731 = vmatpush3.msra.mxu0 %v2977_v40 }
 0x4b9   :  { %3675 = vmatmul.mubr.msk.f32.gmra.mxu0 %vm256_vm4, %v2959_v17  ;;  %3741 = vmatprep.subr.mxu0 %v3953_v1  ;;  %v2999_v17 = vld [vmem:[%s4979_s7 + $0x28] sm:$0xff] }
 0x4ba   :  { %3677 = vmatprep.mubr.msk.f32.mxu0 %vm3954_vm1, %v3953_v1 }
 0x4bd   :  { %3678 = vmatmul.mubr.msk.f32.gmra.mxu0 %vm256_vm4, %v2960_v18  ;;  %v1965_v18 = vld [vmem:[%s4979_s7 + $0x8] sm:$0xff] }
 0x4be   :  { %3732 = vmatprep.mubr.msk.f32.mxu0 %vm3954_vm1, %v3953_v1 }
 0x55b   :  { %v1362_v21 = vpop.f32.mrf.mxu0 }
 0x55c   :  { %v1376_v22 = vadd.f32 %v1362_v21, %v1188_v57 }
 0x55d   :  { %v3638_v23 = vpop.f32.mrf.mxu0 }
 0x55f   :  { %v1367_v24 = vpop.f32.mrf.mxu0 }
 0x560   :  { %v1377_v25 = vadd.f32 %v1367_v24, %v1189_v63 }
 0x561   :  { %v3641_v26 = vpop.f32.mrf.mxu0 }
 0x563   :  { %v1372_v27 = vpop.f32.mrf.mxu0 }
 0x564   :  { %v1378_v28 = vadd.f32 %v1372_v27, %v1190_v8 }
 0x565   :  { %v3644_v29 = vpop.f32.mrf.mxu0 }
 0x575   :  { %v1458_v30 = vpop.f32.mrf.mxu0 }
 0x576   :  { %3685 = vmatmul.mubr.msk.f32.vlgmr.msra.gmra.mxu1 %vm448_vm5, %v1458_v30 }
 0x577   :  { %3694 = vmatpush3.msk.msra.mxu1 %vm266_vm3, %v4130_v48  ;;  %v3673_v31 = vpop.f32.mrf.mxu0  ;;  %3687 = vmatprep.mubr.msk.f32.mxu1 %vm3954_vm1, %v3953_v1 }
 0x578   :  { %3695 = vmatprep.subr.mxu1 %v3953_v1 }
 0x579   :  { %3696 = vmatpush3.msra.mxu1 %v4132_v50  ;;  %v1463_v32 = vpop.f32.mrf.mxu0 }
 0x57a   :  { %3697 = vmatprep.subr.mxu1 %v3953_v1  ;;  %3688 = vmatmul.mubr.msk.f32.gmra.mxu1 %vm448_vm5, %v1463_v32 }
 0x57b   :  { %3698 = vmatpush3.msra.mxu1 %v4140_v52  ;;  %v3676_v33 = vpop.f32.mrf.mxu0  ;;  %3690 = vmatprep.mubr.msk.f32.mxu1 %vm3954_vm1, %v3953_v1 }
 0x57c   :  { %3699 = vmatprep.subr.mxu1 %v3953_v1 }
 0x57d   :  { %3700 = vmatpush3.msra.mxu1 %v4146_v54  ;;  %v1468_v34 = vpop.f32.mrf.mxu0 }
 0x57e   :  { %3701 = vmatprep.subr.mxu1 %v3953_v1  ;;  %3691 = vmatmul.mubr.msk.f32.gmra.mxu1 %vm448_vm5, %v1468_v34 }
 0x57f   :  { %3702 = vmatpush3.msra.mxu1 %v4152_v56  ;;  %v3679_v35 = vpop.f32.mrf.mxu0  ;;  %3719 = vmatprep.mubr.msk.f32.mxu1 %vm3954_vm1, %v3953_v1 }
 0x580   :  { %3703 = vmatprep.subr.mxu1 %v3953_v1 }
 0x581   :  { %3704 = vmatpush3.msra.mxu1 %v4158_v58 }
 0x582   :  { %3705 = vmatprep.subr.mxu1 %v3953_v1 }
 0x583   :  { %3706 = vmatpush3.msra.mxu1 %v4164_v60 }
 0x584   :  { %3707 = vmatprep.subr.mxu1 %v3953_v1 }
 0x585   :  { %3708 = vmatpush3.msra.mxu1 %v4170_v62 }
 0x586   :  { %3709 = vmatprep.subr.mxu1 %v3953_v1 }
 0x587   :  { %3710 = vmatpush3.msra.mxu1 %v4177_v0 }
 0x588   :  { %3711 = vmatprep.subr.mxu1 %v3953_v1 }
 0x589   :  { %3712 = vmatpush3.msra.mxu1 %v4184_v3 }
 0x58a   :  { %3713 = vmatprep.subr.mxu1 %v3953_v1 }
 0x58b   :  { %3714 = vmatpush3.msra.mxu1 %v4191_v5 }
 0x58c   :  { %3715 = vmatprep.subr.mxu1 %v3953_v1 }
 0x58d   :  { %3716 = vmatpush3.msra.mxu1 %v4197_v6 }
 0x58e   :  { %3717 = vmatprep.subr.mxu1 %v3953_v1 }
 0x58f   :  { %3718 = vmatpush3.msra.mxu1 %v4203_v7 }
 0x590   :  { %3720 = vmatmul.mubr.msk.f32.vlgmr.msra.gmra.mxu1 %vm256_vm4, %v2970_v36  ;;  %3776 = vmatprep.subr.mxu1 %v3953_v1 }
 0x591   :  { %3722 = vmatprep.mubr.msk.f32.mxu1 %vm3954_vm1, %v3953_v1 }
 0x594   :  { %3723 = vmatmul.mubr.msk.f32.gmra.mxu1 %vm256_vm4, %v2971_v37  ;;  %v1962_v37 = vld [vmem:[%s4980_s8] sm:$0x3] }
 0x595   :  { %3725 = vmatprep.mubr.msk.f32.mxu1 %vm3954_vm1, %v3953_v1 }
 0x598   :  { %3726 = vmatmul.mubr.msk.f32.gmra.mxu1 %vm256_vm4, %v2972_v38  ;;  %v3011_v38 = vld [vmem:[%s4979_s7 + $0x78] sm:$0xff] }
 0x599   :  { %3780 = vmatprep.mubr.msk.f32.mxu1 %vm3954_vm1, %v3953_v1 }
 0x636   :  { %v1550_v41 = vpop.f32.mrf.mxu1 }
 0x637   :  { %v1564_v42 = vadd.f32 %v1550_v41, %v1376_v22  ;;  %v2994_v22 = vld [vmem:[%s4978_s6] ss:$0 sm:$0xff]  ;;  %v3010_v41 = vld [vmem:[%s4979_s7 + $0x70] sm:$0xff] }
 0x638   :  { %v3686_v43 = vpop.f32.mrf.mxu1 }
 0x639   :  { %v3006_v43 = vld [vmem:[%s4979_s7 + $0x58] sm:$0xff] }
 0x63a   :  { %v1555_v44 = vpop.f32.mrf.mxu1 }
 0x63b   :  { %v1565_v45 = vadd.f32 %v1555_v44, %v1377_v25  ;;  %v3009_v44 = vld [vmem:[%s4979_s7 + $0x68] sm:$0xff] }
 0x63c   :  { %v3689_v46 = vpop.f32.mrf.mxu1 }
 0x63d   :  { %v3008_v46 = vld [vmem:[%s4979_s7 + $0x60] sm:$0xff] }
 0x63e   :  { %v1560_v47 = vpop.f32.mrf.mxu1 }
 0x63f   :  { %v1566_v49 = vadd.f32 %v1560_v47, %v1378_v28  ;;  %v3004_v47 = vld [vmem:[%s4979_s7 + $0x48] sm:$0xff] }
 0x640   :  { %v3692_v51 = vpop.f32.mrf.mxu1 }
 0x650   :  { %v1646_v53 = vpop.f32.mrf.mxu1 }
 0x651   :  { %3733 = vmatmul.mubr.msk.f32.vlgmr.msra.gmra.mxu0 %vm448_vm5, %v1646_v53  ;;  %v3003_v53 = vld [vmem:[%s4979_s7 + $0x40] sm:$0xff] }
 0x652   :  { %3742 = vmatpush3.msk.msra.mxu0 %vm266_vm3, %v4130_v48  ;;  %v3721_v55 = vpop.f32.mrf.mxu1  ;;  %3735 = vmatprep.mubr.msk.f32.mxu0 %vm3954_vm1, %v3953_v1 }
 0x653   :  { %3743 = vmatprep.subr.mxu0 %v3953_v1  ;;  %v3020_v55 = vld [vmem:[%s4979_s7 + $0xb0] sm:$0xff] }
 0x654   :  { %3744 = vmatpush3.msra.mxu0 %v4132_v50  ;;  %v1651_v57 = vpop.f32.mrf.mxu1 }
 0x655   :  { %3745 = vmatprep.subr.mxu0 %v3953_v1  ;;  %3736 = vmatmul.mubr.msk.f32.gmra.mxu0 %vm448_vm5, %v1651_v57 }
 0x656   :  { %3746 = vmatpush3.msra.mxu0 %v4140_v52  ;;  %v3724_v59 = vpop.f32.mrf.mxu1  ;;  %3738 = vmatprep.mubr.msk.f32.mxu0 %vm3954_vm1, %v3953_v1  ;;  %v2982_v52 = vld [vmem:[%s4976_s4 + $0xc0] sm:$0xff] }
 0x657   :  { %3747 = vmatprep.subr.mxu0 %v3953_v1  ;;  %v3016_v59 = vld [vmem:[%s4979_s7 + $0x98] sm:$0xff] }
 0x658   :  { %3748 = vmatpush3.msra.mxu0 %v4146_v54  ;;  %v1656_v48 = vpop.f32.mrf.mxu1  ;;  %v2983_v54 = vld [vmem:[%s4976_s4 + $0xc8] sm:$0xff] }
 0x659   :  { %3749 = vmatprep.subr.mxu0 %v3953_v1  ;;  %3739 = vmatmul.mubr.msk.f32.gmra.mxu0 %vm448_vm5, %v1656_v48  ;;  %v3019_v48 = vld [vmem:[%s4979_s7 + $0xa8] sm:$0xff] }
 0x65a   :  { %3750 = vmatpush3.msra.mxu0 %v4152_v56  ;;  %v3727_v50 = vpop.f32.mrf.mxu1  ;;  %3767 = vmatprep.mubr.msk.f32.mxu0 %vm3954_vm1, %v3953_v1  ;;  %v2984_v56 = vld [vmem:[%s4976_s4 + $0xd0] sm:$0x3] }
 0x65b   :  { %3751 = vmatprep.subr.mxu0 %v3953_v1  ;;  %v3015_v50 = vld [vmem:[%s4979_s7 + $0x90] sm:$0xff] }
 0x65c   :  { %3752 = vmatpush3.msra.mxu0 %v4158_v58  ;;  %v2990_v58 = vld [vmem:[%s4977_s5 + $0x88] sm:$0xff] }
 0x65d   :  { %3753 = vmatprep.subr.mxu0 %v3953_v1  ;;  %3777 = vmatpush3.msra.mxu1 %v2990_v58 }
 0x65e   :  { %3754 = vmatpush3.msra.mxu0 %v4164_v60  ;;  %v2989_v60 = vld [vmem:[%s4977_s5 + $0x80] sm:$0xff]  ;;  %3778 = vmatprep.subr.mxu1 %v3953_v1 }
 0x65f   :  { %3755 = vmatprep.subr.mxu0 %v3953_v1  ;;  %3779 = vmatpush3.msra.mxu1 %v2989_v60  ;;  %v3013_v60 = vld [vmem:[%s4979_s7 + $0x80] sm:$0xff] }
 0x660   :  { %3756 = vmatpush3.msra.mxu0 %v4170_v62  ;;  %3789 = vmatprep.subr.mxu1 %v3953_v1 }
 0x661   :  { %3757 = vmatprep.subr.mxu0 %v3953_v1 }
 0x662   :  { %3758 = vmatpush3.msra.mxu0 %v4177_v0 }
 0x663   :  { %3759 = vmatprep.subr.mxu0 %v3953_v1 }
 0x664   :  { %3760 = vmatpush3.msra.mxu0 %v4184_v3 }
 0x665   :  { %3761 = vmatprep.subr.mxu0 %v3953_v1 }
 0x666   :  { %3762 = vmatpush3.msra.mxu0 %v4191_v5 }
 0x667   :  { %3763 = vmatprep.subr.mxu0 %v3953_v1 }
 0x668   :  { %3764 = vmatpush3.msra.mxu0 %v4197_v6 }
 0x669   :  { %3765 = vmatprep.subr.mxu0 %v3953_v1 }
 0x66a   :  { %3766 = vmatpush3.msra.mxu0 %v4203_v7 }
 0x66b   :  { %3768 = vmatmul.mubr.msk.f32.vlgmr.msra.gmra.mxu0 %vm256_vm4, %v2982_v52  ;;  %3805 = vmatprep.subr.mxu0 %v3953_v1  ;;  %v3018_v52 = vld [vmem:[%s4979_s7 + $0xa0] sm:$0xff] }
 0x66c   :  { %3770 = vmatprep.mubr.msk.f32.mxu0 %vm3954_vm1, %v3953_v1  ;;  %3806 = vmatpush3.msra.mxu0 %v3001_v13  ;;  %v2782_v13 = vld [vmem:[%s4982_s10 + $0x78] sm:$0xff] }
 0x66d   :  { %3807 = vmatprep.subr.mxu0 %v3953_v1 }
 0x66e   :  { %3808 = vmatpush3.msra.mxu0 %v3000_v15  ;;  %v2780_v15 = vld [vmem:[%s4982_s10 + $0x68] sm:$0xff] }
 0x66f   :  { %3771 = vmatmul.mubr.msk.f32.gmra.mxu0 %vm256_vm4, %v2983_v54  ;;  %3809 = vmatprep.subr.mxu0 %v3953_v1  ;;  %v3014_v54 = vld [vmem:[%s4979_s7 + $0x88] sm:$0xff] }
 0x670   :  { %3773 = vmatprep.mubr.msk.f32.mxu0 %vm3954_vm1, %v3953_v1  ;;  %3810 = vmatpush3.msra.mxu0 %v2999_v17  ;;  %v2778_v17 = vld [vmem:[%s4982_s10 + $0x58] sm:$0xff] }
 0x671   :  { %3811 = vmatprep.subr.mxu0 %v3953_v1 }
 0x672   :  { %3812 = vmatpush3.msra.mxu0 %v2998_v19  ;;  %v2776_v19 = vld [vmem:[%s4982_s10 + $0x48] sm:$0xff] }
 0x673   :  { %3774 = vmatmul.mubr.msk.f32.gmra.mxu0 %vm256_vm4, %v2984_v56  ;;  %3827 = vmatprep.subr.mxu0 %v3953_v1  ;;  %v3031_v56 = vld [vmem:[%s4979_s7 + $0xf8] sm:$0xff] }
 0x674   :  { %3813 = vmatprep.mubr.msk.f32.mxu0 %vm3954_vm1, %v3953_v1 }
 0x711   :  { %v1738_v62 = vpop.f32.mrf.mxu0 }
 0x712   :  { %v1752_v0 = vadd.f32 %v1738_v62, %v1564_v42  ;;  %v1961_v42 = vld [vmem:[%s4973_s1] sm:$0x3]  ;;  %v3030_v62 = vld [vmem:[%s4979_s7 + $0xf0] sm:$0xff] }
 0x713   :  { %v3734_v3 = vpop.f32.mrf.mxu0 }
 0x714   :  { %v3026_v3 = vld [vmem:[%s4979_s7 + $0xd8] sm:$0xff] }
 0x715   :  { %v1743_v5 = vpop.f32.mrf.mxu0 }
 0x716   :  { %v1753_v6 = vadd.f32 %v1743_v5, %v1565_v45  ;;  %v3005_v45 = vld [vmem:[%s4979_s7 + $0x50] sm:$0xff]  ;;  %v3029_v5 = vld [vmem:[%s4979_s7 + $0xe8] sm:$0xff] }
 0x717   :  { %v3737_v7 = vpop.f32.mrf.mxu0 }
 0x718   :  { %v3028_v7 = vld [vmem:[%s4979_s7 + $0xe0] sm:$0xff] }
 0x719   :  { %v1748_v61 = vpop.f32.mrf.mxu0 }
 0x71a   :  { %v1754_v63 = vadd.f32 %v1748_v61, %v1566_v49  ;;  %v3021_v49 = vld [vmem:[%s4979_s7 + $0xb8] sm:$0xff]  ;;  %v3024_v61 = vld [vmem:[%s4979_s7 + $0xc8] sm:$0xff] }
 0x71b   :  { %v3740_v2 = vpop.f32.mrf.mxu0 }
 0x71c   :  { %v3023_v2 = vld [vmem:[%s4979_s7 + $0xc0] sm:$0xff] }
 0x72b   :  { %v1834_v4 = vpop.f32.mrf.mxu0 }
 0x72c   :  { %3781 = vmatmul.mubr.msk.f32.vlgmr.msra.gmra.mxu1 %vm448_vm5, %v1834_v4  ;;  %v3036_v4 = vld [vmem:[%s4979_s7 + $0x118] sm:$0xff] }
 0x72d   :  { %v3769_v8 = vpop.f32.mrf.mxu0  ;;  %3783 = vmatprep.mubr.msk.f32.mxu1 %vm3954_vm1, %v3953_v1  ;;  %3790 = vmatpush3.msra.mxu1 %v1967_v14  ;;  %v2781_v14 = vld [vmem:[%s4982_s10 + $0x70] sm:$0xff] }
 0x72e   :  { %3791 = vmatprep.subr.mxu1 %v3953_v1 }
 0x72f   :  { %v1839_v9 = vpop.f32.mrf.mxu0  ;;  %3792 = vmatpush3.msra.mxu1 %v1966_v16  ;;  %v2779_v16 = vld [vmem:[%s4982_s10 + $0x60] sm:$0xff] }
 0x730   :  { %3784 = vmatmul.mubr.msk.f32.gmra.mxu1 %vm448_vm5, %v1839_v9  ;;  %3793 = vmatprep.subr.mxu1 %v3953_v1  ;;  %v3035_v9 = vld [vmem:[%s4979_s7 + $0x110] sm:$0xff] }
 0x731   :  { %v3772_v10 = vpop.f32.mrf.mxu0  ;;  %3786 = vmatprep.mubr.msk.f32.mxu1 %vm3954_vm1, %v3953_v1  ;;  %3794 = vmatpush3.msra.mxu1 %v1965_v18  ;;  %v2777_v18 = vld [vmem:[%s4982_s10 + $0x50] sm:$0xff] }
 0x732   :  { %3795 = vmatprep.subr.mxu1 %v3953_v1  ;;  %v3034_v10 = vld [vmem:[%s4979_s7 + $0x108] sm:$0xff] }
 0x733   :  { %v1844_v11 = vpop.f32.mrf.mxu0  ;;  %3796 = vmatpush3.msra.mxu1 %v1964_v20  ;;  %v2775_v20 = vld [vmem:[%s4982_s10 + $0x40] sm:$0xff] }
 0x734   :  { %3787 = vmatmul.mubr.msk.f32.gmra.mxu1 %vm448_vm5, %v1844_v11  ;;  %3800 = vmatprep.subr.mxu1 %v3953_v1  ;;  %v3033_v11 = vld [vmem:[%s4979_s7 + $0x100] sm:$0xff] }
 0x735   :  { %v3775_v12 = vpop.f32.mrf.mxu0  ;;  %3797 = vmatprep.mubr.msk.f32.mxu1 %vm3954_vm1, %v3953_v1 }
 0x7ec   :  { %v1926_v21 = vpop.f32.mrf.mxu1 }
 0x7ed   :  { %v1940_v23 = vadd.f32 %v1926_v21, %v1752_v0  ;;  %v2774_v21 = vld [vmem:[%s4982_s10 + $0x38] sm:$0xff] }
 0x7ee   :  { %v3782_v24 = vpop.f32.mrf.mxu1 }
 0x7ef   :  { %v1950_v25 = vadd.f32 %v2994_v22, %v1940_v23  ;;  %v2772_v23 = vld [vmem:[%s4982_s10 + $0x28] sm:$0xff]  ;;  %v2771_v24 = vld [vmem:[%s4982_s10 + $0x20] sm:$0xff] }
 0x7f0   :  { %v1931_v26 = vpop.f32.mrf.mxu1 }
 0x7f1   :  { %v1953_v27 = vmax.f32 %v1950_v25, 0.0  ;;  %v1941_v28 = vadd.f32 %v1931_v26, %v1753_v6  ;;  %v3025_v6 = vld [vmem:[%s4979_s7 + $0xd0] sm:$0xff]  ;;  %v2770_v25 = vld [vmem:[%s4982_s10 + $0x18] sm:$0xff] }
 0x7f2   :  { %v3785_v29 = vpop.f32.mrf.mxu1  ;;  %v2769_v26 = vld [vmem:[%s4982_s10 + $0x10] sm:$0xff] }
 0x7f3   :  { %1957 = vst.msk [vmem:[#allocation2] sm:$0xff] %vm1956_vm6, %v1953_v27  ;;  %v1951_v30 = vadd.f32 %v2994_v22, %v1941_v28  ;;  %v2768_v27 = vld [vmem:[%s4982_s10 + $0x8] sm:$0xff]  ;;  %v2767_v28 = vld [vmem:[%s4982_s10] sm:$0xff] }
 0x7f4   :  { %v1936_v31 = vpop.f32.mrf.mxu1 }
 0x7f5   :  { %v1954_v32 = vmax.f32 %v1951_v30, 0.0  ;;  %v1942_v33 = vadd.f32 %v1936_v31, %v1754_v63 }
 0x7f6   :  { %v3788_v34 = vpop.f32.mrf.mxu1 }
 0x7f7   :  { %1958 = vst.msk [vmem:[#allocation2 + $0x8] sm:$0xff] %vm1956_vm6, %v1954_v32  ;;  %v1952_v35 = vadd.f32 %v2994_v22, %v1942_v33  ;;  %v2773_v22 = vld [vmem:[%s4982_s10 + $0x30] sm:$0xff] }
 0x7f9   :  { %v1955_v36 = vmax.f32 %v1952_v35, 0.0 }
 0x7fa   :  { %v1963_v39 = vld [vmem:[#allocation2] sm:$0x3]  ;;  %v2118_v40 = vld [vmem:[#allocation2 + $0x2] sm:$0x3]  ;;  %v2278_v51 = vld [vmem:[#allocation2 + $0x6] sm:$0x3] }
 0x7fb   :  { %1960 = vst.msk [vmem:[#allocation2 + $0x10] sm:$0x3] %vm1959_vm7, %v1955_v36  ;;  %3798 = vmatmul.mubr.msk.f32.vlgmr.msra.gmra.mxu1 %vm1956_vm6, %v1963_v39  ;;  %3814 = vmatmul.mubr.msk.f32.vlgmr.msra.gmra.mxu0 %vm1956_vm6, %v2118_v40  ;;  %v2198_v57 = vld [vmem:[#allocation2 + $0x4] sm:$0x3] }
 0x7fc   :  { %3801 = vmatpush3.msk.msra.mxu1 %vm266_vm3, %v1962_v37  ;;  %3828 = vmatpush3.msra.mxu0 %v3011_v38 }
 0x7fd   :  { %3829 = vmatprep.subr.mxu0 %v3953_v1  ;;  %3802 = vmatprep.mubr.msk.f32.mxu1 %vm3954_vm1, %v3953_v1 }
 0x7fe   :  { %3830 = vmatpush3.msra.mxu0 %v3010_v41  ;;  %3816 = vmatprep.subr.mxu1 %v3953_v1  ;;  %v2438_v58 = vld [vmem:[#allocation2 + $0xa] sm:$0x3]  ;;  %v2358_v0 = vld [vmem:[#allocation2 + $0x8] sm:$0x3]  ;;  %v2598_v63 = vld [vmem:[#allocation2 + $0xe] sm:$0x3] }
 0x7ff   :  { %3831 = vmatprep.subr.mxu0 %v3953_v1  ;;  %3803 = vmatmul.mubr.msk.f32.vlgmr.msra.gmra.mxu1 %vm2041_vm8, %v1961_v42  ;;  %v2518_v8 = vld [vmem:[#allocation2 + $0xc] sm:$0x3] }
 0x800   :  { %3817 = vmatpush3.msra.mxu1 %v3006_v43  ;;  %3832 = vmatpush3.msra.mxu0 %v3009_v44 }
 0x801   :  { %3818 = vmatprep.subr.mxu1 %v3953_v1  ;;  %3833 = vmatprep.subr.mxu0 %v3953_v1 }
 0x802   :  { %3819 = vmatpush3.msra.mxu1 %v3005_v45  ;;  %3834 = vmatpush3.msra.mxu0 %v3008_v46  ;;  %v2678_v12 = vld [vmem:[#allocation2 + $0x10] sm:$0x3] }
 0x803   :  { %3835 = vmatprep.mubr.msk.f32.mxu0 %vm3954_vm1, %v3953_v1  ;;  %3820 = vmatprep.subr.mxu1 %v3953_v1 }
 0x804   :  { %3836 = vmatmul.mubr.msk.f32.vlgmr.msra.gmra.mxu0 %vm1956_vm6, %v2278_v51  ;;  %3849 = vmatprep.subr.mxu0 %v3953_v1 }
 0x805   :  { %3821 = vmatpush3.msra.mxu1 %v3004_v47  ;;  %3850 = vmatpush3.msra.mxu0 %v3021_v49 }
 0x806   :  { %3822 = vmatprep.subr.mxu1 %v3953_v1  ;;  %3851 = vmatprep.subr.mxu0 %v3953_v1 }
 0x807   :  { %3823 = vmatpush3.msra.mxu1 %v3003_v53  ;;  %3824 = vmatprep.mubr.msk.f32.mxu1 %vm3954_vm1, %v3953_v1 }
 0x808   :  { %3852 = vmatpush3.msra.mxu0 %v3020_v55  ;;  %3825 = vmatmul.mubr.msk.f32.vlgmr.msra.gmra.mxu1 %vm1956_vm6, %v2198_v57 }
 0x809   :  { %3838 = vmatprep.subr.mxu1 %v3953_v1  ;;  %3853 = vmatprep.subr.mxu0 %v3953_v1 }
 0x80a   :  { %3839 = vmatpush3.msra.mxu1 %v3016_v59  ;;  %3854 = vmatpush3.msra.mxu0 %v3019_v48 }
 0x80b   :  { %3840 = vmatprep.subr.mxu1 %v3953_v1  ;;  %3855 = vmatprep.subr.mxu0 %v3953_v1 }
 0x80c   :  { %3841 = vmatpush3.msra.mxu1 %v3015_v50  ;;  %3856 = vmatpush3.msra.mxu0 %v3018_v52  ;;  %v3038_v50 = vld [vmem:[%s4981_s9] ss:$0 sm:$0xff] }
 0x80d   :  { %3857 = vmatprep.mubr.msk.f32.mxu0 %vm3954_vm1, %v3953_v1  ;;  %3842 = vmatprep.subr.mxu1 %v3953_v1 }
 0x80e   :  { %3858 = vmatmul.mubr.msk.f32.vlgmr.msra.gmra.mxu0 %vm1956_vm6, %v2438_v58  ;;  %3871 = vmatprep.subr.mxu0 %v3953_v1 }
 0x80f   :  { %3843 = vmatpush3.msra.mxu1 %v3014_v54  ;;  %3872 = vmatpush3.msra.mxu0 %v3031_v56 }
 0x810   :  { %3844 = vmatprep.subr.mxu1 %v3953_v1  ;;  %3873 = vmatprep.subr.mxu0 %v3953_v1 }
 0x811   :  { %3845 = vmatpush3.msra.mxu1 %v3013_v60  ;;  %3846 = vmatprep.mubr.msk.f32.mxu1 %vm3954_vm1, %v3953_v1  ;;  %v3039_v60 = vld [vmem:[%s4983_s11] ss:$0 sm:$0xff] }
 0x812   :  { %3874 = vmatpush3.msra.mxu0 %v3030_v62  ;;  %3847 = vmatmul.mubr.msk.f32.vlgmr.msra.gmra.mxu1 %vm1956_vm6, %v2358_v0 }
 0x813   :  { %3860 = vmatprep.subr.mxu1 %v3953_v1  ;;  %3875 = vmatprep.subr.mxu0 %v3953_v1 }
 0x814   :  { %3861 = vmatpush3.msra.mxu1 %v3026_v3  ;;  %3876 = vmatpush3.msra.mxu0 %v3029_v5 }
 0x815   :  { %3862 = vmatprep.subr.mxu1 %v3953_v1  ;;  %3877 = vmatprep.subr.mxu0 %v3953_v1 }
 0x816   :  { %3863 = vmatpush3.msra.mxu1 %v3025_v6  ;;  %3878 = vmatpush3.msra.mxu0 %v3028_v7 }
 0x817   :  { %3879 = vmatprep.mubr.msk.f32.mxu0 %vm3954_vm1, %v3953_v1  ;;  %3864 = vmatprep.subr.mxu1 %v3953_v1 }
 0x818   :  { %3880 = vmatmul.mubr.msk.f32.vlgmr.msra.gmra.mxu0 %vm1956_vm6, %v2598_v63  ;;  %3865 = vmatpush3.msra.mxu1 %v3024_v61 }
 0x819   :  { %3866 = vmatprep.subr.mxu1 %v3953_v1  ;;  %3868 = vmatprep.mubr.msk.f32.mxu1 %vm3954_vm1, %v3953_v1 }
 0x81a   :  { %3867 = vmatpush3.msra.mxu1 %v3023_v2  ;;  %3893 = vmatprep.subr.mxu0 %v3953_v1 }
 0x81b   :  { %3869 = vmatmul.mubr.msk.f32.vlgmr.msra.gmra.mxu1 %vm1956_vm6, %v2518_v8  ;;  %3882 = vmatprep.subr.mxu1 %v3953_v1 }
 0x81c   :  { %3883 = vmatpush3.msra.mxu1 %v3036_v4  ;;  %3890 = vmatprep.mubr.msk.f32.mxu1 %vm3954_vm1, %v3953_v1 }
 0x81d   :  { %3884 = vmatprep.subr.mxu1 %v3953_v1  ;;  %3925 = vmatprep.mubr.msk.f32.mxu0 %vm3954_vm1, %v3953_v1 }
 0x81e   :  { %3885 = vmatpush3.msra.mxu1 %v3035_v9  ;;  %3894 = vmatpush3.msra.mxu0 %v2782_v13 }
 0x81f   :  { %3886 = vmatprep.subr.mxu1 %v3953_v1  ;;  %3895 = vmatprep.subr.mxu0 %v3953_v1 }
 0x820   :  { %3887 = vmatpush3.msra.mxu1 %v3034_v10  ;;  %3896 = vmatpush3.msra.mxu0 %v2781_v14 }
 0x821   :  { %3888 = vmatprep.subr.mxu1 %v3953_v1  ;;  %3897 = vmatprep.subr.mxu0 %v3953_v1 }
 0x822   :  { %3889 = vmatpush3.msra.mxu1 %v3033_v11  ;;  %3898 = vmatpush3.msra.mxu0 %v2780_v15 }
 0x823   :  { %3891 = vmatmul.mubr.msk.f32.vlgmr.msra.gmra.mxu1 %vm1956_vm6, %v2678_v12  ;;  %3899 = vmatprep.subr.mxu0 %v3953_v1 }
 0x824   :  { %3900 = vmatpush3.msra.mxu0 %v2779_v16 }
 0x825   :  { %3901 = vmatprep.subr.mxu0 %v3953_v1 }
 0x826   :  { %3902 = vmatpush3.msra.mxu0 %v2778_v17 }
 0x827   :  { %3903 = vmatprep.subr.mxu0 %v3953_v1 }
 0x828   :  { %3904 = vmatpush3.msra.mxu0 %v2777_v18 }
 0x829   :  { %3905 = vmatprep.subr.mxu0 %v3953_v1 }
 0x82a   :  { %3906 = vmatpush3.msra.mxu0 %v2776_v19 }
 0x82b   :  { %3907 = vmatprep.subr.mxu0 %v3953_v1 }
 0x82c   :  { %3908 = vmatpush3.msra.mxu0 %v2775_v20 }
 0x82d   :  { %3909 = vmatprep.subr.mxu0 %v3953_v1 }
 0x82e   :  { %3910 = vmatpush3.msra.mxu0 %v2774_v21 }
 0x82f   :  { %3911 = vmatprep.subr.mxu0 %v3953_v1 }
 0x830   :  { %3912 = vmatpush3.msra.mxu0 %v2773_v22 }
 0x831   :  { %3913 = vmatprep.subr.mxu0 %v3953_v1 }
 0x832   :  { %3914 = vmatpush3.msra.mxu0 %v2772_v23 }
 0x833   :  { %3915 = vmatprep.subr.mxu0 %v3953_v1 }
 0x834   :  { %3916 = vmatpush3.msra.mxu0 %v2771_v24 }
 0x835   :  { %3917 = vmatprep.subr.mxu0 %v3953_v1 }
 0x836   :  { %3918 = vmatpush3.msra.mxu0 %v2770_v25 }
 0x837   :  { %3919 = vmatprep.subr.mxu0 %v3953_v1 }
 0x838   :  { %3920 = vmatpush3.msra.mxu0 %v2769_v26 }
 0x839   :  { %3921 = vmatprep.subr.mxu0 %v3953_v1 }
 0x83a   :  { %3922 = vmatpush3.msra.mxu0 %v2768_v27 }
 0x83b   :  { %3923 = vmatprep.subr.mxu0 %v3953_v1 }
 0x83c   :  { %3924 = vmatpush3.msra.mxu0 %v2767_v28 }
 0x8bb   :  { %v2037_v29 = vpop.f32.mrf.mxu1  ;;  %v2193_v30 = vpop.f32.mrf.mxu0 }
 0x8bd   :  { %v3799_v31 = vpop.f32.mrf.mxu1  ;;  %v3815_v32 = vpop.f32.mrf.mxu0 }
 0x8bf   :  { %v2114_v33 = vpop.f32.mrf.mxu1 }
 0x8c0   :  { %v2115_v39 = vadd.f32 %v2114_v33, %v2037_v29 }
 0x8c1   :  { %v3804_v34 = vpop.f32.mrf.mxu1 }
 0x8c2   :  { %v2197_v41 = vadd.f32 %v2193_v30, %v2115_v39 }
 0x8c4   :  { %v2353_v35 = vpop.f32.mrf.mxu0 }
 0x8c6   :  { %v3837_v36 = vpop.f32.mrf.mxu0 }
 0x8c8   :  { %v2273_v37 = vpop.f32.mrf.mxu1 }
 0x8c9   :  { %v2277_v43 = vadd.f32 %v2273_v37, %v2197_v41 }
 0x8ca   :  { %v3826_v38 = vpop.f32.mrf.mxu1 }
 0x8cb   :  { %v2357_v46 = vadd.f32 %v2353_v35, %v2277_v43 }
 0x8ce   :  { %v2513_v40 = vpop.f32.mrf.mxu0 }
 0x8d0   :  { %v3859_v42 = vpop.f32.mrf.mxu0 }
 0x8d2   :  { %v2433_v44 = vpop.f32.mrf.mxu1 }
 0x8d3   :  { %v2437_v1 = vadd.f32 %v2433_v44, %v2357_v46 }
 0x8d4   :  { %v3848_v45 = vpop.f32.mrf.mxu1 }
 0x8d5   :  { %v2517_v53 = vadd.f32 %v2513_v40, %v2437_v1 }
 0x8d8   :  { %v2673_v47 = vpop.f32.mrf.mxu0 }
 0x8da   :  { %v3881_v49 = vpop.f32.mrf.mxu0 }
 0x8db   :  { %v2593_v51 = vpop.f32.mrf.mxu1 }
 0x8dc   :  { %v2597_v57 = vadd.f32 %v2593_v51, %v2517_v53 }
 0x8dd   :  { %v3870_v55 = vpop.f32.mrf.mxu1 }
 0x8de   :  { %v2677_v59 = vadd.f32 %v2673_v47, %v2597_v57 }
 0x8e3   :  { %v2753_v48 = vpop.f32.mrf.mxu1 }
 0x8e4   :  { %v2757_v52 = vadd.f32 %v2753_v48, %v2677_v59 }
 0x8e5   :  { %v3892_v54 = vpop.f32.mrf.mxu1 }
 0x8e6   :  { %v2765_v56 = vadd.f32 %v3038_v50, %v2757_v52 }
 0x8e8   :  { %v2766_v58 = vmax.f32 %v2765_v56, 0.0 }
 0x8ea   :  { %3926 = vmatmul.mubr.f32.vlgmr.msra.gmra.mxu0 %v2766_v58 }
 0x9aa   :  { %v2856_v62 = vpop.f32.mrf.mxu0 }
 0x9ab   :  { %v2857_v0 = vadd.f32 %v3039_v60, %v2856_v62 }
 0x9ac   :  { %v3927_v3 = vpop.f32.mrf.mxu0 }
 0x9ad   :  { %2861 = vst.msk [vmem:[#allocation3] sm:$0x3] %vm2860_vm9, %v2857_v0 }
 0x9ae   :  { %3942 = shalt.err (!%p3939_p4)
}
 0x9af   :  { %2871 = dma.vmem_to_hbm [thread:$0]  %s2869_s29, 32, %s4984_s12, [#allocation4]  }
 0x9b0   :  { %3951 = dma.done.wait [#allocation4], 32  }
 0x9b1   :  { %3952 = vsyncadd [#allocation4], 4294967264 }
 0x9b2   :  { %2875 = vsyncpa [#allocation4], 1 }

</bundles_post_ra>
